<compile_context>
chip_gen: v5e
topology: v5e:2x2
jax: 0.10.0
libtpu: 0.0.40
codegen_flags: <defaults>
</compile_context>

<pallas_src>
import jax
import jax.numpy as jnp
from jax.experimental import pallas as pl
from jax.experimental.pallas import tpu as pltpu

HIDDEN = 1024          # nn.Linear(embedding_dim, 1024)
HCHUNK = 512           # first-matmul output slab width (128-lane aligned; 2 slabs over HIDDEN)
LN_EPS = 1e-5          # torch.nn.LayerNorm default eps


def projection_head_kernel(x_ref, w1_ref, b1_ref, w2_ref, b2_ref, gamma_ref, beta_ref,
                           o_ref, h_ref):
    # x:    (tb, E)       bf16
    # w1:   (E, HIDDEN)   bf16      b1: (1, HIDDEN) f32
    # w2:   (HIDDEN, P)   bf16      b2: (1, P)      f32
    # gamma/beta: (1, P)  f32       o:  (tb, P)
    # h_ref: (tb, HIDDEN) bf16 VMEM scratch (ReLU activations)
    x = x_ref[...]                                   # keep bf16 for the MXU

    # First Linear + ReLU, in HCHUNK-wide slabs written straight into the VMEM scratch as
    # bf16, so no (tb, HIDDEN) f32 intermediate (and no f32 accumulator) stays live in vregs.
    for c in range(HIDDEN // HCHUNK):                # static loop -> static, 128-aligned slices
        lo = c * HCHUNK
        h = jnp.dot(x, w1_ref[:, lo:lo + HCHUNK],
                    preferred_element_type=jnp.float32)
        h = jnp.maximum(h + b1_ref[:, lo:lo + HCHUNK], 0.0)   # bias + ReLU in f32
        # Dropout: module evaluated in inference mode -> identity.
        # TODO(synk): training-mode dropout (pltpu.prng_random_bits mask + 1/(1-p) scale).
        h_ref[:, lo:lo + HCHUNK] = h.astype(jnp.bfloat16)

    # Second Linear: one K=HIDDEN matmul so the MXU accumulates the reduction internally.
    y = jnp.dot(h_ref[...], w2_ref[...], preferred_element_type=jnp.float32) + b2_ref[...]

    # LayerNorm over last dim (f32 math; biased variance matches torch.nn.LayerNorm).
    mean = jnp.mean(y, axis=-1, keepdims=True)
    centered = y - mean
    var = jnp.mean(centered * centered, axis=-1, keepdims=True)
    y_norm = centered * jax.lax.rsqrt(var + LN_EPS)
    o_ref[...] = (y_norm * gamma_ref[...] + beta_ref[...]).astype(o_ref.dtype)


def _round_up(n, m):
    return ((n + m - 1) // m) * m


def _pick_tb(B):
    """Fixed-size batch tile (<= 256, sublane-aligned). The batch is zero-padded up to a
    whole number of tiles (cdiv grid), so awkward B never collapses the M tile. For small
    batches we still produce >= 2 grid steps so v7x's two TensorCores both get work."""
    if B <= 8:
        return 8
    n_steps = max(2, pl.cdiv(B, 256))
    return _round_up(pl.cdiv(B, n_steps), 8)


def _const_spec(shape):
    """Grid-invariant operand: constant index_map + single-buffered (no re-DMA needed),
    halving resident weight VMEM. Falls back to the default spec on older jax."""
    idx = lambda i: (0,) * len(shape)
    try:
        return pl.BlockSpec(shape, idx, pipeline_mode=pl.Buffered(1))
    except Exception:
        return pl.BlockSpec(shape, idx)


def _vmem_limit_bytes():
    """Generation-aware VMEM cap: ~75% of physical (48 MiB on v7x, 96 MiB on v5e/v6e)."""
    try:
        cap = pltpu.get_tpu_info().vmem_capacity_bytes
    except Exception:
        cap = 64 * 1024 * 1024
    return int(cap) * 3 // 4


def projection_head(x, w1, b1, w2, b2, gamma, beta, *, tb=None, out_dtype=jnp.float32):
    """x: [B, E] -> [B, P] (out_dtype, default float32; pass bf16 to halve output traffic)."""
    B, E = x.shape
    P = w2.shape[1]
    assert w1.shape == (E, HIDDEN) and b1.shape == (1, HIDDEN)
    assert b2.shape == (1, P) and gamma.shape == (1, P) and beta.shape == (1, P)
    # Lane-dense output guard: pad projection_dim to a multiple of 128 upstream if needed.
    assert P % 128 == 0, "projection_dim must be a multiple of 128 (pad it) for dense vst"

    if tb is None:
        tb = _pick_tb(B)
    steps = pl.cdiv(B, tb)
    B_pad = steps * tb                              # cdiv grid: padded rows sliced off below

    # Lane-align the first matmul's contraction dim: zero-pad E to a multiple of 128
    # (zero columns of x / zero rows of W1 contribute nothing to x @ W1).
    E_pad = max(128, _round_up(E, 128))

    # bf16 matmul operands (f32 accumulation happens inside the kernel).
    xb = jnp.zeros((B_pad, E_pad), jnp.bfloat16).at[:B, :E].set(x.astype(jnp.bfloat16))
    w1b = jnp.zeros((E_pad, HIDDEN), jnp.bfloat16).at[:E, :].set(w1.astype(jnp.bfloat16))
    w2b = w2.astype(jnp.bfloat16)

    out = pl.pallas_call(
        projection_head_kernel,
        out_shape=jax.ShapeDtypeStruct((B_pad, P), out_dtype),
        grid_spec=pltpu.PrefetchScalarGridSpec(
            num_scalar_prefetch=0,
            grid=(steps,),
            in_specs=[
                pl.BlockSpec((tb, E_pad), lambda i: (i, 0)),   # x tile (streams over batch)
                _const_spec((E_pad, HIDDEN)),                  # W1 (resident, single-buffered)
                _const_spec((1, HIDDEN)),                      # b1
                _const_spec((HIDDEN, P)),                      # W2 (resident, single-buffered)
                _const_spec((1, P)),                           # b2
                _const_spec((1, P)),                           # gamma
                _const_spec((1, P)),                           # beta
            ],
            out_specs=pl.BlockSpec((tb, P), lambda i: (i, 0)),
            scratch_shapes=[pltpu.VMEM((tb, HIDDEN), jnp.bfloat16)],  # ReLU activations
        ),
        compiler_params=pltpu.CompilerParams(
            dimension_semantics=("parallel",),       # batch tiles shard across v7x's 2 TCs
            vmem_limit_bytes=_vmem_limit_bytes(),    # ~48 MiB v7x, ~96 MiB v5e/v6e
        ),
    )(xb, w1b, b1, w2b, b2, gamma, beta)
    return out[:B]


def reference(x, w1, b1, w2, b2, gamma, beta, matmul_dtype=jnp.float32):
    """Pure-JAX reference. matmul_dtype=bf16 mirrors the kernel's MXU precision."""
    xd = x.astype(matmul_dtype)
    h = jnp.dot(xd, w1.astype(matmul_dtype), preferred_element_type=jnp.float32) + b1
    h = jnp.maximum(h, 0.0)
    y = jnp.dot(h.astype(matmul_dtype), w2.astype(matmul_dtype),
                preferred_element_type=jnp.float32) + b2
    mean = jnp.mean(y, axis=-1, keepdims=True)
    var = jnp.mean((y - mean) ** 2, axis=-1, keepdims=True)
    return (y - mean) * jax.lax.rsqrt(var + LN_EPS) * gamma + beta


if __name__ == "__main__":
    key = jax.random.PRNGKey(0)
    B = 8                 # batch (any B works: wrapper pads to whole tiles)
    E = 32                # embedding_dim (lane-sparse: wrapper zero-pads to 128)
    P = 256               # projection_dim stand-in (lane-aligned multiple of 128)

    k1, k2, k3, k4, k5 = jax.random.split(key, 5)
    x = jax.random.normal(k1, (B, E), dtype=jnp.float32)

    # Deterministic parameter init (PyTorch-Linear-style uniform bounds).
    lim1 = 1.0 / jnp.sqrt(E)
    w1 = jax.random.uniform(k2, (E, HIDDEN), minval=-lim1, maxval=lim1, dtype=jnp.float32)
    b1 = jax.random.uniform(k3, (1, HIDDEN), minval=-lim1, maxval=lim1, dtype=jnp.float32)
    lim2 = 1.0 / jnp.sqrt(HIDDEN)
    w2 = jax.random.uniform(k4, (HIDDEN, P), minval=-lim2, maxval=lim2, dtype=jnp.float32)
    b2 = jax.random.uniform(k5, (1, P), minval=-lim2, maxval=lim2, dtype=jnp.float32)
    gamma = jnp.ones((1, P), dtype=jnp.float32)   # LayerNorm weight init
    beta = jnp.zeros((1, P), dtype=jnp.float32)   # LayerNorm bias init

    out = projection_head(x, w1, b1, w2, b2, gamma, beta)
    out = jax.block_until_ready(out)
    assert out.shape == (B, P)

    # Tight check vs. a reference on the same bf16-matmul / f32-accumulate path.
    ref_bf16 = reference(x, w1, b1, w2, b2, gamma, beta, matmul_dtype=jnp.bfloat16)
    assert jnp.allclose(out, ref_bf16, atol=2e-3, rtol=2e-3), "mismatch vs bf16-path reference"

    # Coarse semantic check vs. the full-f32 PyTorch-equivalent reference
    # (slack covers bf16 operand rounding; LayerNorm output has unit scale).
    ref_f32 = reference(x, w1, b1, w2, b2, gamma, beta, matmul_dtype=jnp.float32)
    assert jnp.allclose(out, ref_f32, atol=1e-1, rtol=1e-1), "mismatch vs f32 reference"

    print("KERNEL_OK")
</pallas_src>

<mosaic_0001>
module attributes {stable_mosaic.version = 11 : i64} {
  func.func @projection_head_kernel(%arg0: i32, %arg1: memref<8x128xbf16, #tpu.memory_space<vmem>>, %arg2: memref<128x1024xbf16, #tpu.memory_space<vmem>>, %arg3: memref<1x1024xf32, #tpu.memory_space<vmem>>, %arg4: memref<1024x256xbf16, #tpu.memory_space<vmem>>, %arg5: memref<1x256xf32, #tpu.memory_space<vmem>>, %arg6: memref<1x256xf32, #tpu.memory_space<vmem>>, %arg7: memref<1x256xf32, #tpu.memory_space<vmem>>, %arg8: memref<8x256xf32, #tpu.memory_space<vmem>>, %arg9: memref<8x1024xbf16, #tpu.memory_space<vmem>>) attributes {dimension_semantics = [#tpu.dimension_semantics<parallel>], iteration_bounds = array<i64: 1>, scalar_prefetch = 0 : i64, scratch_operands = 1 : i64, tpu.core_type = #tpu.core_type<tc>, window_params = [{transform_indices = @transform_0, window_bounds = array<i64: 8, 128>}, {pipeline_mode = #tpu.pipeline_mode<synchronous>, transform_indices = @transform_1, window_bounds = array<i64: 128, 1024>}, {pipeline_mode = #tpu.pipeline_mode<synchronous>, transform_indices = @transform_2, window_bounds = array<i64: 1, 1024>}, {pipeline_mode = #tpu.pipeline_mode<synchronous>, transform_indices = @transform_3, window_bounds = array<i64: 1024, 256>}, {pipeline_mode = #tpu.pipeline_mode<synchronous>, transform_indices = @transform_4, window_bounds = array<i64: 1, 256>}, {pipeline_mode = #tpu.pipeline_mode<synchronous>, transform_indices = @transform_5, window_bounds = array<i64: 1, 256>}, {pipeline_mode = #tpu.pipeline_mode<synchronous>, transform_indices = @transform_6, window_bounds = array<i64: 1, 256>}, {transform_indices = @transform_7, window_bounds = array<i64: 8, 256>}]} {
    %c0 = arith.constant 0 : index
    %c0_0 = arith.constant 0 : index
    %0 = vector.load %arg1[%c0, %c0_0] : memref<8x128xbf16, #tpu.memory_space<vmem>>, vector<8x128xbf16>
    %c0_1 = arith.constant 0 : index
    %c0_2 = arith.constant 0 : index
    %1 = vector.load %arg2[%c0_1, %c0_2] : memref<128x1024xbf16, #tpu.memory_space<vmem>>, vector<128x512xbf16>
    %cst = arith.constant dense<0.000000e+00> : vector<8x512xf32>
    %2 = tpu.matmul %0, %1, %cst {dimension_numbers = #tpu.dot_dimension_numbers<[1], [0], [0], [1], [0, 0, 1, 1], [], []>} : vector<8x128xbf16>, vector<128x512xbf16>, vector<8x512xf32> -> vector<8x512xf32>
    %c0_3 = arith.constant 0 : index
    %c0_4 = arith.constant 0 : index
    %3 = vector.load %arg3[%c0_3, %c0_4] : memref<1x1024xf32, #tpu.memory_space<vmem>>, vector<1x512xf32>
    %4 = vector.broadcast %3 : vector<1x512xf32> to vector<8x512xf32>
    %5 = arith.addf %2, %4 : vector<8x512xf32>
    %cst_5 = arith.constant 0.000000e+00 : f32
    %6 = vector.broadcast %cst_5 : f32 to vector<8x512xf32>
    %7 = arith.maximumf %5, %6 : vector<8x512xf32>
    %8 = arith.truncf %7 : vector<8x512xf32> to vector<8x512xbf16>
    %c0_6 = arith.constant 0 : index
    %c0_7 = arith.constant 0 : index
    %9 = vector.load %arg9[%c0_6, %c0_7] : memref<8x1024xbf16, #tpu.memory_space<vmem>>, vector<8x512xbf16>
    tpu.vector_store %arg9[%c0_6, %c0_7], %8 {strides = array<i32>} : memref<8x1024xbf16, #tpu.memory_space<vmem>>, vector<8x512xbf16>,
    %c0_8 = arith.constant 0 : index
    %c512 = arith.constant 512 : index
    %10 = vector.load %arg2[%c0_8, %c512] : memref<128x1024xbf16, #tpu.memory_space<vmem>>, vector<128x512xbf16>
    %cst_9 = arith.constant dense<0.000000e+00> : vector<8x512xf32>
    %11 = tpu.matmul %0, %10, %cst_9 {dimension_numbers = #tpu.dot_dimension_numbers<[1], [0], [0], [1], [0, 0, 1, 1], [], []>} : vector<8x128xbf16>, vector<128x512xbf16>, vector<8x512xf32> -> vector<8x512xf32>
    %c0_10 = arith.constant 0 : index
    %c512_11 = arith.constant 512 : index
    %12 = vector.load %arg3[%c0_10, %c512_11] : memref<1x1024xf32, #tpu.memory_space<vmem>>, vector<1x512xf32>
    %13 = vector.broadcast %12 : vector<1x512xf32> to vector<8x512xf32>
    %14 = arith.addf %11, %13 : vector<8x512xf32>
    %cst_12 = arith.constant 0.000000e+00 : f32
    %15 = vector.broadcast %cst_12 : f32 to vector<8x512xf32>
    %16 = arith.maximumf %14, %15 : vector<8x512xf32>
    %17 = arith.truncf %16 : vector<8x512xf32> to vector<8x512xbf16>
    %c0_13 = arith.constant 0 : index
    %c512_14 = arith.constant 512 : index
    %18 = vector.load %arg9[%c0_13, %c512_14] : memref<8x1024xbf16, #tpu.memory_space<vmem>>, vector<8x512xbf16>
    tpu.vector_store %arg9[%c0_13, %c512_14], %17 {strides = array<i32>} : memref<8x1024xbf16, #tpu.memory_space<vmem>>, vector<8x512xbf16>,
    %c0_15 = arith.constant 0 : index
    %c0_16 = arith.constant 0 : index
    %19 = vector.load %arg9[%c0_15, %c0_16] : memref<8x1024xbf16, #tpu.memory_space<vmem>>, vector<8x1024xbf16>
    %c0_17 = arith.constant 0 : index
    %c0_18 = arith.constant 0 : index
    %20 = vector.load %arg4[%c0_17, %c0_18] : memref<1024x256xbf16, #tpu.memory_space<vmem>>, vector<1024x256xbf16>
    %cst_19 = arith.constant dense<0.000000e+00> : vector<8x256xf32>
    %21 = tpu.matmul %19, %20, %cst_19 {dimension_numbers = #tpu.dot_dimension_numbers<[1], [0], [0], [1], [0, 0, 1, 1], [], []>} : vector<8x1024xbf16>, vector<1024x256xbf16>, vector<8x256xf32> -> vector<8x256xf32>
    %c0_20 = arith.constant 0 : index
    %c0_21 = arith.constant 0 : index
    %22 = vector.load %arg5[%c0_20, %c0_21] : memref<1x256xf32, #tpu.memory_space<vmem>>, vector<1x256xf32>
    %23 = vector.broadcast %22 : vector<1x256xf32> to vector<8x256xf32>
    %24 = arith.addf %21, %23 : vector<8x256xf32>
    %cst_22 = arith.constant dense<0.000000e+00> : vector<8xf32>
    %25 = vector.multi_reduction <add>, %24, %cst_22 [1] : vector<8x256xf32> to vector<8xf32>
    %26 = vector.shape_cast %25 : vector<8xf32> to vector<8x1xf32>
    %cst_23 = arith.constant 2.560000e+02 : f32
    %27 = vector.broadcast %cst_23 : f32 to vector<8x1xf32>
    %28 = arith.divf %26, %27 : vector<8x1xf32>
    %29 = vector.broadcast %28 : vector<8x1xf32> to vector<8x256xf32>
    %30 = arith.subf %24, %29 : vector<8x256xf32>
    %31 = arith.mulf %30, %30 : vector<8x256xf32>
    %cst_24 = arith.constant dense<0.000000e+00> : vector<8xf32>
    %32 = vector.multi_reduction <add>, %31, %cst_24 [1] : vector<8x256xf32> to vector<8xf32>
    %33 = vector.shape_cast %32 : vector<8xf32> to vector<8x1xf32>
    %cst_25 = arith.constant 2.560000e+02 : f32
    %34 = vector.broadcast %cst_25 : f32 to vector<8x1xf32>
    %35 = arith.divf %33, %34 : vector<8x1xf32>
    %cst_26 = arith.constant 9.99999974E-6 : f32
    %36 = vector.broadcast %cst_26 : f32 to vector<8x1xf32>
    %37 = arith.addf %35, %36 : vector<8x1xf32>
    %38 = math.rsqrt %37 : vector<8x1xf32>
    %39 = vector.broadcast %38 : vector<8x1xf32> to vector<8x256xf32>
    %40 = arith.mulf %30, %39 : vector<8x256xf32>
    %c0_27 = arith.constant 0 : index
    %c0_28 = arith.constant 0 : index
    %41 = vector.load %arg6[%c0_27, %c0_28] : memref<1x256xf32, #tpu.memory_space<vmem>>, vector<1x256xf32>
    %42 = vector.broadcast %41 : vector<1x256xf32> to vector<8x256xf32>
    %43 = arith.mulf %40, %42 : vector<8x256xf32>
    %c0_29 = arith.constant 0 : index
    %c0_30 = arith.constant 0 : index
    %44 = vector.load %arg7[%c0_29, %c0_30] : memref<1x256xf32, #tpu.memory_space<vmem>>, vector<1x256xf32>
    %45 = vector.broadcast %44 : vector<1x256xf32> to vector<8x256xf32>
    %46 = arith.addf %43, %45 : vector<8x256xf32>
    %c0_31 = arith.constant 0 : index
    %c0_32 = arith.constant 0 : index
    %47 = vector.load %arg8[%c0_31, %c0_32] : memref<8x256xf32, #tpu.memory_space<vmem>>, vector<8x256xf32>
    tpu.vector_store %arg8[%c0_31, %c0_32], %46 {strides = array<i32>} : memref<8x256xf32, #tpu.memory_space<vmem>>, vector<8x256xf32>,
    return
  }
  func.func @transform_0(%arg0: i32) -> (i32, i32) {
    %c0_i32 = arith.constant 0 : i32
    %c0_i32_0 = arith.constant 0 : i32
    return %arg0, %c0_i32 : i32, i32
  }
  func.func @transform_1(%arg0: i32) -> (i32, i32) {
    %c0_i32 = arith.constant 0 : i32
    %c0_i32_0 = arith.constant 0 : i32
    %c0_i32_1 = arith.constant 0 : i32
    return %c0_i32, %c0_i32_0 : i32, i32
  }
  func.func @transform_2(%arg0: i32) -> (i32, i32) {
    %c0_i32 = arith.constant 0 : i32
    %c0_i32_0 = arith.constant 0 : i32
    %c0_i32_1 = arith.constant 0 : i32
    return %c0_i32, %c0_i32_0 : i32, i32
  }
  func.func @transform_3(%arg0: i32) -> (i32, i32) {
    %c0_i32 = arith.constant 0 : i32
    %c0_i32_0 = arith.constant 0 : i32
    %c0_i32_1 = arith.constant 0 : i32
    return %c0_i32, %c0_i32_0 : i32, i32
  }
  func.func @transform_4(%arg0: i32) -> (i32, i32) {
    %c0_i32 = arith.constant 0 : i32
    %c0_i32_0 = arith.constant 0 : i32
    %c0_i32_1 = arith.constant 0 : i32
    return %c0_i32, %c0_i32_0 : i32, i32
  }
  func.func @transform_5(%arg0: i32) -> (i32, i32) {
    %c0_i32 = arith.constant 0 : i32
    %c0_i32_0 = arith.constant 0 : i32
    %c0_i32_1 = arith.constant 0 : i32
    return %c0_i32, %c0_i32_0 : i32, i32
  }
  func.func @transform_6(%arg0: i32) -> (i32, i32) {
    %c0_i32 = arith.constant 0 : i32
    %c0_i32_0 = arith.constant 0 : i32
    %c0_i32_1 = arith.constant 0 : i32
    return %c0_i32, %c0_i32_0 : i32, i32
  }
  func.func @transform_7(%arg0: i32) -> (i32, i32) {
    %c0_i32 = arith.constant 0 : i32
    %c0_i32_0 = arith.constant 0 : i32
    return %arg0, %c0_i32 : i32, i32
  }
}

</mosaic_0001>

<bundles_post_ra>
// kernel: tpu_custom_call.1
= control target key start
LH: loop header
LB: loop body
LE: loop exit
PB: predicated region body
PF: predicated region fallthrough
CT: control target
= control target key end

     0   :  { %12 = vsyncpa [#allocation4], 0  ;;  %s2957_s0 = inlined_call_operand.hbm [shape: bf16[8,128], index: 0, kind: input, shape index: {}]   ;;  %s2958_s1 = inlined_call_operand.hbm [shape: bf16[128,1024], index: 1, kind: input, shape index: {}]   ;;  %s2959_s2 = inlined_call_operand.hbm [shape: f32[1,1024], index: 2, kind: input, shape index: {}]   ;;  %s2960_s3 = inlined_call_operand.hbm [shape: bf16[1024,256], index: 3, kind: input, shape index: {}]   ;;  %s2961_s4 = inlined_call_operand.vmem [shape: f32[1,256], index: 4, kind: input, shape index: {}]   ;;  %s2962_s5 = inlined_call_operand.vmem [shape: f32[1,256], index: 5, kind: input, shape index: {}]   ;;  %s2963_s6 = inlined_call_operand.hbm [shape: f32[1,256], index: 6, kind: input, shape index: {}]   ;;  %s2964_s7 = inlined_call_operand.hbm [shape: f32[8,256], index: 7, kind: output, shape index: {}]  }
   0x1   :  { %13 = vsyncpa [#allocation7], 0 }
   0x2   :  { %14 = vsyncpa [#allocation10], 0  ;;  %s31_s26 = sshll.u32 %s2958_s1, 4  ;;  %s32_s26 = int_to_ptr.hbm [resolvable:$true] %s31_s26 }
   0x3   :  { %15 = vsyncpa [#allocation5], 0  ;;  %s2834_s27 = smov [#allocation6]   ;;  %s55_s8 = sshll.u32 %s2960_s3, 4  ;;  %s56_s8 = int_to_ptr.hbm [resolvable:$true] %s55_s8 }
   0x4   :  { %s33_s28 = sshll.u32 %s2834_s27, 4  ;;  %s2835_s9 = smov 512   ;;  %s34_s28 = int_to_ptr.vmem [resolvable:$true] %s33_s28 }
   0x5   :  { %s2836_s10 = smov 32   ;;  %s2837_s11 = smov [#allocation9]  }
   0x6   :  { %39 = dma.hbm_to_vmem [thread:$0]  %s32_s26, 8192, %s34_s28, [#allocation7], %s2835_s9, %s2835_s9, %s2836_s10  }
   0x7   :  { %s57_s12 = sshll.u32 %s2837_s11, 4  ;;  %s2838_s13 = smov 128   ;;  %s58_s12 = int_to_ptr.vmem [resolvable:$true] %s57_s12 }
   0x8   :  { %s2839_s14 = smov 8   ;;  %s21_s16 = sshll.u32 %s2957_s0, 4  ;;  %s22_s16 = int_to_ptr.hbm [resolvable:$true] %s21_s16 }
   0x9   :  { %63 = dma.hbm_to_vmem [thread:$0]  %s56_s8, 16384, %s58_s12, [#allocation10], %s2838_s13, %s2838_s13, %s2839_s14  }
   0xa   :  { %s2840_s17 = smov [#allocation3]   ;;  %s45_s20 = sshll.u32 %s2959_s2, 4  ;;  %s46_s20 = int_to_ptr.hbm [resolvable:$true] %s45_s20 }
   0xb   :  { %s23_s18 = sshll.u32 %s2840_s17, 4  ;;  %s2841_s21 = smov [#allocation8]   ;;  %s24_s18 = int_to_ptr.vmem [resolvable:$true] %s23_s18 }
   0xc   :  { %26 = dma.hbm_to_vmem [thread:$0]  %s22_s16, 64, %s24_s18, [#allocation4]  }
   0xd   :  { %s47_s22 = sshll.u32 %s2841_s21, 4  ;;  %s73_s25 = sshll.u32 %s2963_s6, 4  ;;  %s48_s22 = int_to_ptr.vmem [resolvable:$true] %s47_s22  ;;  %s74_s25 = int_to_ptr.hbm [resolvable:$true] %s73_s25 }
   0xe   :  { %50 = dma.hbm_to_vmem [thread:$0]  %s46_s20, 128, %s48_s22, [#allocation7]  }
   0xf   :  { %s2842_s0 = smov [#allocation11]  }
  0x10   :  { %s75_s26 = sshll.u32 %s2842_s0, 4  ;;  %s76_s26 = int_to_ptr.vmem [resolvable:$true] %s75_s26 }
  0x11   :  { %78 = dma.hbm_to_vmem [thread:$0]  %s74_s25, 32, %s76_s26, [#allocation10]  }
  0x12   :  { %2826 = dma.done.wait [#allocation4], 64  }
  0x13   :  { %2827 = vsyncadd [#allocation4], 4294967232 }
  0x14   :  { %2828 = dma.done.wait [#allocation7], 8320  }
  0x15   :  { %2829 = vsyncadd [#allocation7], 4294958976 }
  0x16   :  { %2830 = dma.done.wait [#allocation10], 16416  }
  0x17   :  { %2831 = vsyncadd [#allocation10], 4294950880  ;;  %v1821_v0 = vld [vmem:[#allocation6 + $0x1c0] sm:$0xf]  ;;  %v2503_v2 = vld [vmem:[#allocation6 + $0x1c4] sm:$0xf] }
  0x18   :  { %v2505_v1 = vld [vmem:[#allocation6 + $0x1dc] sm:$0xf0]  ;;  %v1823_v4 = vld [vmem:[#allocation6 + $0x1e0] sm:$0xf0]  ;;  %v1829_v5 = vld [vmem:[#allocation6 + $0x1c8] sm:$0xf] }
  0x19   :  { %v1822_v3 = vor.u32 %v2505_v1, %v1821_v0  ;;  %v2506_v6 = vld [vmem:[#allocation6 + $0x1e4] sm:$0xf0]  ;;  %v1826_v7 = vor.u32 %v2503_v2, %v1823_v4  ;;  %v2504_v9 = vld [vmem:[#allocation6 + $0x1cc] sm:$0xf]  ;;  %v1805_v11 = vld [vmem:[#allocation6 + $0x180] sm:$0xf] }
  0x1a   :  { %v1830_v8 = vor.u32 %v2506_v6, %v1829_v5  ;;  %v1831_v10 = vld [vmem:[#allocation6 + $0x1e8] sm:$0xf0]  ;;  %v2501_v13 = vld [vmem:[#allocation6 + $0x19c] sm:$0xf0]  ;;  %v2499_v14 = vld [vmem:[#allocation6 + $0x184] sm:$0xf] }
  0x1b   :  { %302 = vmatpush.bf16.msra.mxu0 %v1822_v3  ;;  %v1834_v12 = vor.u32 %v2504_v9, %v1831_v10  ;;  %v1807_v15 = vld [vmem:[#allocation6 + $0x1a0] sm:$0xf0]  ;;  %315 = vmatpush.bf16.msra.mxu1 %v1826_v7  ;;  %v1806_v16 = vor.u32 %v2501_v13, %v1805_v11  ;;  %v1813_v18 = vld [vmem:[#allocation6 + $0x188] sm:$0xf]  ;;  %v2500_v20 = vld [vmem:[#allocation6 + $0x18c] sm:$0xf] }
  0x1c   :  { %328 = vmatpush.bf16.msra.mxu2 %v1830_v8  ;;  %v1810_v17 = vor.u32 %v2499_v14, %v1807_v15  ;;  %v2502_v19 = vld [vmem:[#allocation6 + $0x1a4] sm:$0xf0]  ;;  %v1815_v22 = vld [vmem:[#allocation6 + $0x1a8] sm:$0xf0]  ;;  %v1789_v23 = vld [vmem:[#allocation6 + $0x140] sm:$0xf] }
  0x1d   :  { %341 = vmatpush.bf16.msra.mxu3 %v1834_v12  ;;  %v1814_v21 = vor.u32 %v2502_v19, %v1813_v18  ;;  %v2497_v24 = vld [vmem:[#allocation6 + $0x15c] sm:$0xf0]  ;;  %v1818_v25 = vor.u32 %v2500_v20, %v1815_v22  ;;  %v2495_v26 = vld [vmem:[#allocation6 + $0x144] sm:$0xf]  ;;  %v1797_v28 = vld [vmem:[#allocation6 + $0x148] sm:$0xf] }
  0x1e   :  { %v1791_v27 = vld [vmem:[#allocation6 + $0x160] sm:$0xf0]  ;;  %v1790_v29 = vor.u32 %v2497_v24, %v1789_v23  ;;  %v2498_v30 = vld [vmem:[#allocation6 + $0x164] sm:$0xf0]  ;;  %v2496_v31 = vld [vmem:[#allocation6 + $0x14c] sm:$0xf] }
  0x1f   :  { %303 = vmatpush.bf16.msra.mxu0 %v1806_v16  ;;  %v1799_v32 = vld [vmem:[#allocation6 + $0x168] sm:$0xf0]  ;;  %316 = vmatpush.bf16.msra.mxu1 %v1810_v17  ;;  %v1794_v33 = vor.u32 %v2495_v26, %v1791_v27  ;;  %v1798_v34 = vor.u32 %v2498_v30, %v1797_v28  ;;  %v1773_v35 = vld [vmem:[#allocation6 + $0x100] sm:$0xf]  ;;  %v2491_v37 = vld [vmem:[#allocation6 + $0x104] sm:$0xf] }
  0x20   :  { %329 = vmatpush.bf16.msra.mxu2 %v1814_v21  ;;  %v2493_v36 = vld [vmem:[#allocation6 + $0x11c] sm:$0xf0]  ;;  %v1802_v38 = vor.u32 %v2496_v31, %v1799_v32  ;;  %v1775_v39 = vld [vmem:[#allocation6 + $0x120] sm:$0xf0]  ;;  %v1781_v40 = vld [vmem:[#allocation6 + $0x108] sm:$0xf] }
  0x21   :  { %342 = vmatpush.bf16.msra.mxu3 %v1818_v25  ;;  %v2494_v41 = vld [vmem:[#allocation6 + $0x124] sm:$0xf0]  ;;  %v2492_v42 = vld [vmem:[#allocation6 + $0x10c] sm:$0xf]  ;;  %v1774_v44 = vor.u32 %v2493_v36, %v1773_v35  ;;  %v1778_v45 = vor.u32 %v2491_v37, %v1775_v39  ;;  %v1757_v47 = vld [vmem:[#allocation6 + $0xc0] sm:$0xf] }
  0x22   :  { %v1783_v43 = vld [vmem:[#allocation6 + $0x128] sm:$0xf0]  ;;  %v1782_v46 = vor.u32 %v2494_v41, %v1781_v40  ;;  %v2489_v48 = vld [vmem:[#allocation6 + $0xdc] sm:$0xf0]  ;;  %v2487_v49 = vld [vmem:[#allocation6 + $0xc4] sm:$0xf] }
  0x23   :  { %304 = vmatpush.bf16.msra.mxu0 %v1790_v29  ;;  %317 = vmatpush.bf16.msra.mxu1 %v1794_v33  ;;  %v1786_v50 = vor.u32 %v2492_v42, %v1783_v43  ;;  %v1759_v51 = vld [vmem:[#allocation6 + $0xe0] sm:$0xf0]  ;;  %v1765_v52 = vld [vmem:[#allocation6 + $0xc8] sm:$0xf]  ;;  %v2488_v54 = vld [vmem:[#allocation6 + $0xcc] sm:$0xf]  ;;  %v1758_v56 = vor.u32 %v2489_v48, %v1757_v47 }
  0x24   :  { %330 = vmatpush.bf16.msra.mxu2 %v1798_v34  ;;  %v2490_v53 = vld [vmem:[#allocation6 + $0xe4] sm:$0xf0]  ;;  %v1767_v55 = vld [vmem:[#allocation6 + $0xe8] sm:$0xf0]  ;;  %v1762_v57 = vor.u32 %v2487_v49, %v1759_v51  ;;  %v1741_v59 = vld [vmem:[#allocation6 + $0x80] sm:$0xf] }
  0x25   :  { %343 = vmatpush.bf16.msra.mxu3 %v1802_v38  ;;  %v1766_v58 = vor.u32 %v2490_v53, %v1765_v52  ;;  %v2485_v60 = vld [vmem:[#allocation6 + $0x9c] sm:$0xf0]  ;;  %v2483_v61 = vld [vmem:[#allocation6 + $0x84] sm:$0xf]  ;;  %v1770_v62 = vor.u32 %v2488_v54, %v1767_v55  ;;  %v1749_v0 = vld [vmem:[#allocation6 + $0x88] sm:$0xf] }
  0x26   :  { %v1743_v63 = vld [vmem:[#allocation6 + $0xa0] sm:$0xf0]  ;;  %v2486_v1 = vld [vmem:[#allocation6 + $0xa4] sm:$0xf0]  ;;  %v2484_v2 = vld [vmem:[#allocation6 + $0x8c] sm:$0xf]  ;;  %v1742_v4 = vor.u32 %v2485_v60, %v1741_v59 }
  0x27   :  { %305 = vmatpush.bf16.msra.mxu0 %v1774_v44  ;;  %318 = vmatpush.bf16.msra.mxu1 %v1778_v45  ;;  %v1751_v3 = vld [vmem:[#allocation6 + $0xa8] sm:$0xf0]  ;;  %v1746_v5 = vor.u32 %v2483_v61, %v1743_v63  ;;  %v1750_v6 = vor.u32 %v2486_v1, %v1749_v0  ;;  %v1725_v7 = vld [vmem:[#allocation6 + $0x40] sm:$0xf]  ;;  %v2479_v9 = vld [vmem:[#allocation6 + $0x44] sm:$0xf] }
  0x28   :  { %331 = vmatpush.bf16.msra.mxu2 %v1782_v46  ;;  %v2481_v8 = vld [vmem:[#allocation6 + $0x5c] sm:$0xf0]  ;;  %v1754_v10 = vor.u32 %v2484_v2, %v1751_v3  ;;  %v1727_v11 = vld [vmem:[#allocation6 + $0x60] sm:$0xf0]  ;;  %v1733_v12 = vld [vmem:[#allocation6 + $0x48] sm:$0xf] }
  0x29   :  { %344 = vmatpush.bf16.msra.mxu3 %v1786_v50  ;;  %v2482_v13 = vld [vmem:[#allocation6 + $0x64] sm:$0xf0]  ;;  %v2480_v14 = vld [vmem:[#allocation6 + $0x4c] sm:$0xf]  ;;  %v1726_v16 = vor.u32 %v2481_v8, %v1725_v7  ;;  %v1709_v17 = vld [vmem:[#allocation6] sm:$0xf]  ;;  %v1730_v19 = vor.u32 %v2479_v9, %v1727_v11 }
  0x2a   :  { %v1735_v15 = vld [vmem:[#allocation6 + $0x68] sm:$0xf0]  ;;  %v2477_v18 = vld [vmem:[#allocation6 + $0x1c] sm:$0xf0]  ;;  %v1734_v20 = vor.u32 %v2482_v13, %v1733_v12  ;;  %v2475_v21 = vld [vmem:[#allocation6 + $0x4] sm:$0xf] }
  0x2b   :  { %306 = vmatpush.bf16.msra.mxu0 %v1758_v56  ;;  %319 = vmatpush.bf16.msra.mxu1 %v1762_v57  ;;  %v1711_v22 = vld [vmem:[#allocation6 + $0x20] sm:$0xf0]  ;;  %v1717_v23 = vld [vmem:[#allocation6 + $0x8] sm:$0xf]  ;;  %v1738_v24 = vor.u32 %v2480_v14, %v1735_v15  ;;  %v2476_v26 = vld [vmem:[#allocation6 + $0xc] sm:$0xf]  ;;  %v1710_v31 = vor.u32 %v2477_v18, %v1709_v17 }
  0x2c   :  { %332 = vmatpush.bf16.msra.mxu2 %v1766_v58  ;;  %v2478_v25 = vld [vmem:[#allocation6 + $0x24] sm:$0xf0]  ;;  %v1719_v27 = vld [vmem:[#allocation6 + $0x28] sm:$0xf0]  ;;  %v1949_v28 = vld [vmem:[#allocation6 + $0x1d0] sm:$0xf]  ;;  %v1714_v35 = vor.u32 %v2475_v21, %v1711_v22 }
  0x2d   :  { %345 = vmatpush.bf16.msra.mxu3 %v1770_v62  ;;  %v2537_v29 = vld [vmem:[#allocation6 + $0x1ec] sm:$0xf0]  ;;  %v2535_v30 = vld [vmem:[#allocation6 + $0x1d4] sm:$0xf]  ;;  %v1957_v33 = vld [vmem:[#allocation6 + $0x1d8] sm:$0xf]  ;;  %v1718_v36 = vor.u32 %v2478_v25, %v1717_v23  ;;  %v1722_v39 = vor.u32 %v2476_v26, %v1719_v27 }
  0x2e   :  { %v1951_v32 = vld [vmem:[#allocation6 + $0x1f0] sm:$0xf0]  ;;  %v2538_v34 = vld [vmem:[#allocation6 + $0x1f4] sm:$0xf0]  ;;  %v2536_v37 = vld [vmem:[#allocation6 + $0x1dc] sm:$0xf]  ;;  %v1950_v40 = vor.u32 %v2537_v29, %v1949_v28 }
  0x2f   :  { %307 = vmatpush.bf16.msra.mxu0 %v1742_v4  ;;  %320 = vmatpush.bf16.msra.mxu1 %v1746_v5  ;;  %v1959_v38 = vld [vmem:[#allocation6 + $0x1f8] sm:$0xf0]  ;;  %v1954_v41 = vor.u32 %v2535_v30, %v1951_v32  ;;  %v1958_v42 = vor.u32 %v2538_v34, %v1957_v33  ;;  %v1933_v43 = vld [vmem:[#allocation6 + $0x190] sm:$0xf]  ;;  %v2531_v45 = vld [vmem:[#allocation6 + $0x194] sm:$0xf] }
  0x30   :  { %333 = vmatpush.bf16.msra.mxu2 %v1750_v6  ;;  %v2533_v44 = vld [vmem:[#allocation6 + $0x1ac] sm:$0xf0]  ;;  %v1962_v46 = vor.u32 %v2536_v37, %v1959_v38  ;;  %v1935_v47 = vld [vmem:[#allocation6 + $0x1b0] sm:$0xf0]  ;;  %v1941_v48 = vld [vmem:[#allocation6 + $0x198] sm:$0xf] }
  0x31   :  { %346 = vmatpush.bf16.msra.mxu3 %v1754_v10  ;;  %v2534_v49 = vld [vmem:[#allocation6 + $0x1b4] sm:$0xf0]  ;;  %v2900_v50 = vld [vmem:[#allocation3] sm:$0xf]  ;;  %v1934_v53 = vor.u32 %v2533_v44, %v1933_v43  ;;  %v1938_v54 = vor.u32 %v2531_v45, %v1935_v47  ;;  %v1917_v56 = vld [vmem:[#allocation6 + $0x150] sm:$0xf] }
  0x32   :  { %v2532_v51 = vld [vmem:[#allocation6 + $0x19c] sm:$0xf]  ;;  %v1942_v55 = vor.u32 %v2534_v49, %v1941_v48  ;;  %v2529_v57 = vld [vmem:[#allocation6 + $0x16c] sm:$0xf0]  ;;  %v2527_v58 = vld [vmem:[#allocation6 + $0x154] sm:$0xf] }
  0x33   :  { %308 = vmatpush.bf16.msra.mxu0 %v1726_v16  ;;  %321 = vmatpush.bf16.msra.mxu1 %v1730_v19  ;;  %v1943_v52 = vld [vmem:[#allocation6 + $0x1b8] sm:$0xf0]  ;;  %v1919_v60 = vld [vmem:[#allocation6 + $0x170] sm:$0xf0]  ;;  %v1925_v61 = vld [vmem:[#allocation6 + $0x158] sm:$0xf]  ;;  %v1918_v1 = vor.u32 %v2529_v57, %v1917_v56 }
  0x34   :  { %334 = vmatpush.bf16.msra.mxu2 %v1734_v20  ;;  %v1946_v59 = vor.u32 %v2532_v51, %v1943_v52  ;;  %v2530_v62 = vld [vmem:[#allocation6 + $0x174] sm:$0xf0]  ;;  %v2528_v63 = vld [vmem:[#allocation6 + $0x15c] sm:$0xf]  ;;  %v1922_v2 = vor.u32 %v2527_v58, %v1919_v60  ;;  %v1901_v4 = vld [vmem:[#allocation6 + $0x110] sm:$0xf] }
  0x35   :  { %347 = vmatpush.bf16.msra.mxu3 %v1738_v24  ;;  %v1927_v0 = vld [vmem:[#allocation6 + $0x178] sm:$0xf0]  ;;  %v1926_v3 = vor.u32 %v2530_v62, %v1925_v61  ;;  %v2525_v5 = vld [vmem:[#allocation6 + $0x12c] sm:$0xf0]  ;;  %v2523_v6 = vld [vmem:[#allocation6 + $0x114] sm:$0xf] }
  0x36   :  { %v1930_v7 = vor.u32 %v2528_v63, %v1927_v0  ;;  %v1903_v8 = vld [vmem:[#allocation6 + $0x130] sm:$0xf0]  ;;  %v1909_v9 = vld [vmem:[#allocation6 + $0x118] sm:$0xf]  ;;  %v2524_v11 = vld [vmem:[#allocation6 + $0x11c] sm:$0xf]  ;;  %v1902_v13 = vor.u32 %v2525_v5, %v1901_v4 }
  0x37   :  { %309 = vmatpush.bf16.msra.mxu0 %v1710_v31  ;;  %322 = vmatpush.bf16.msra.mxu1 %v1714_v35  ;;  %v2526_v10 = vld [vmem:[#allocation6 + $0x134] sm:$0xf0]  ;;  %v1911_v12 = vld [vmem:[#allocation6 + $0x138] sm:$0xf0]  ;;  %v1906_v14 = vor.u32 %v2523_v6, %v1903_v8  ;;  %v1885_v16 = vld [vmem:[#allocation6 + $0xd0] sm:$0xf] }
  0x38   :  { %335 = vmatpush.bf16.msra.mxu2 %v1718_v36  ;;  %v1910_v15 = vor.u32 %v2526_v10, %v1909_v9  ;;  %v2521_v17 = vld [vmem:[#allocation6 + $0xec] sm:$0xf0]  ;;  %v2519_v18 = vld [vmem:[#allocation6 + $0xd4] sm:$0xf]  ;;  %v1914_v19 = vor.u32 %v2524_v11, %v1911_v12  ;;  %v1893_v21 = vld [vmem:[#allocation6 + $0xd8] sm:$0xf] }
  0x39   :  { %348 = vmatpush.bf16.msra.mxu3 %v1722_v39  ;;  %v1887_v20 = vld [vmem:[#allocation6 + $0xf0] sm:$0xf0]  ;;  %v2522_v22 = vld [vmem:[#allocation6 + $0xf4] sm:$0xf0]  ;;  %v2520_v23 = vld [vmem:[#allocation6 + $0xdc] sm:$0xf]  ;;  %v1886_v25 = vor.u32 %v2521_v17, %v1885_v16 }
  0x3a   :  { %310 = vmatmul.bf16.vlgmr.msra.gmra.mxu0 %v2900_v50  ;;  %323 = vmatmul.bf16.vlgmr.msra.gmra.mxu1 %v2900_v50  ;;  %v1895_v24 = vld [vmem:[#allocation6 + $0xf8] sm:$0xf0]  ;;  %v1890_v26 = vor.u32 %v2519_v18, %v1887_v20  ;;  %v1894_v27 = vor.u32 %v2522_v22, %v1893_v21  ;;  %v1869_v28 = vld [vmem:[#allocation6 + $0x90] sm:$0xf]  ;;  %v2515_v30 = vld [vmem:[#allocation6 + $0x94] sm:$0xf] }
  0x3b   :  { %564 = vmatpush.bf16.msrb.mxu0 %v1950_v40  ;;  %577 = vmatpush.bf16.msrb.mxu1 %v1954_v41  ;;  %v2517_v29 = vld [vmem:[#allocation6 + $0xac] sm:$0xf0]  ;;  %v1898_v31 = vor.u32 %v2520_v23, %v1895_v24  ;;  %v1871_v32 = vld [vmem:[#allocation6 + $0xb0] sm:$0xf0]  ;;  %v1877_v33 = vld [vmem:[#allocation6 + $0x98] sm:$0xf] }
  0x3c   :  { %590 = vmatpush.bf16.msrb.mxu2 %v1958_v42  ;;  %349 = vmatmul.bf16.vlgmr.msra.gmra.mxu3 %v2900_v50  ;;  %v2518_v34 = vld [vmem:[#allocation6 + $0xb4] sm:$0xf0]  ;;  %v2516_v35 = vld [vmem:[#allocation6 + $0x9c] sm:$0xf]  ;;  %v1870_v37 = vor.u32 %v2517_v29, %v1869_v28  ;;  %v1874_v38 = vor.u32 %v2515_v30, %v1871_v32  ;;  %v1853_v40 = vld [vmem:[#allocation6 + $0x50] sm:$0xf] }
  0x3d   :  { %603 = vmatpush.bf16.msrb.mxu3 %v1962_v46  ;;  %336 = vmatmul.bf16.vlgmr.msra.gmra.mxu2 %v2900_v50  ;;  %v1879_v36 = vld [vmem:[#allocation6 + $0xb8] sm:$0xf0]  ;;  %v1878_v39 = vor.u32 %v2518_v34, %v1877_v33  ;;  %v2513_v41 = vld [vmem:[#allocation6 + $0x6c] sm:$0xf0]  ;;  %v2511_v42 = vld [vmem:[#allocation6 + $0x54] sm:$0xf] }
  0x3e   :  { %v1882_v43 = vor.u32 %v2516_v35, %v1879_v36  ;;  %v1855_v44 = vld [vmem:[#allocation6 + $0x70] sm:$0xf0]  ;;  %v1861_v45 = vld [vmem:[#allocation6 + $0x58] sm:$0xf]  ;;  %v2512_v47 = vld [vmem:[#allocation6 + $0x5c] sm:$0xf]  ;;  %v1854_v49 = vor.u32 %v2513_v41, %v1853_v40 }
  0x3f   :  { %565 = vmatpush.bf16.msrb.mxu0 %v1934_v53  ;;  %578 = vmatpush.bf16.msrb.mxu1 %v1938_v54  ;;  %v2514_v46 = vld [vmem:[#allocation6 + $0x74] sm:$0xf0]  ;;  %v1863_v48 = vld [vmem:[#allocation6 + $0x78] sm:$0xf0]  ;;  %v1837_v51 = vld [vmem:[#allocation6 + $0x10] sm:$0xf]  ;;  %v1858_v52 = vor.u32 %v2511_v42, %v1855_v44 }
  0x40   :  { %591 = vmatpush.bf16.msrb.mxu2 %v1942_v55  ;;  %v1862_v53 = vor.u32 %v2514_v46, %v1861_v45  ;;  %v2509_v54 = vld [vmem:[#allocation6 + $0x2c] sm:$0xf0]  ;;  %v2507_v55 = vld [vmem:[#allocation6 + $0x14] sm:$0xf]  ;;  %v1866_v57 = vor.u32 %v2512_v47, %v1863_v48  ;;  %v1845_v58 = vld [vmem:[#allocation6 + $0x18] sm:$0xf] }
  0x41   :  { %604 = vmatpush.bf16.msrb.mxu3 %v1946_v59  ;;  %v1839_v56 = vld [vmem:[#allocation6 + $0x30] sm:$0xf0]  ;;  %v2510_v59 = vld [vmem:[#allocation6 + $0x34] sm:$0xf0]  ;;  %v2508_v60 = vld [vmem:[#allocation6 + $0x1c] sm:$0xf]  ;;  %v1838_v0 = vor.u32 %v2509_v54, %v1837_v51 }
  0x42   :  { %v1847_v61 = vld [vmem:[#allocation6 + $0x38] sm:$0xf0]  ;;  %v2021_v62 = vld [vmem:[#allocation9 + $0x70] sm:$0xf]  ;;  %v2554_v63 = vld [vmem:[#allocation9 + $0x74] sm:$0xf0]  ;;  %v1846_v4 = vor.u32 %v2510_v59, %v1845_v58 }
  0x43   :  { %566 = vmatpush.bf16.msrb.mxu0 %v1918_v1  ;;  %579 = vmatpush.bf16.msrb.mxu1 %v1922_v2  ;;  %v2085_v1 = vld [vmem:[#allocation9 + $0xf0] sm:$0xf]  ;;  %v2570_v2 = vld [vmem:[#allocation9 + $0xf4] sm:$0xf0]  ;;  %v1850_v5 = vor.u32 %v2508_v60, %v1847_v61  ;;  %v2022_v6 = vor.u32 %v2554_v63, %v2021_v62  ;;  %v2552_v11 = vld [vmem:[#allocation9 + $0x64] sm:$0xf0] }
  0x44   :  { %592 = vmatpush.bf16.msrb.mxu2 %v1926_v3  ;;  %v1842_v3 = vor.u32 %v2507_v55, %v1839_v56  ;;  %v2149_v8 = vld [vmem:[#allocation9 + $0x170] sm:$0xf]  ;;  %v2586_v9 = vld [vmem:[#allocation9 + $0x174] sm:$0xf0]  ;;  %v2086_v10 = vor.u32 %v2570_v2, %v2085_v1  ;;  %v2141_v20 = vld [vmem:[#allocation9 + $0x160] sm:$0xf] }
  0x45   :  { %605 = vmatpush.bf16.msrb.mxu3 %v1930_v7  ;;  %v2013_v7 = vld [vmem:[#allocation9 + $0x60] sm:$0xf]  ;;  %v2213_v12 = vld [vmem:[#allocation9 + $0x1f0] sm:$0xf]  ;;  %v2150_v16 = vor.u32 %v2586_v9, %v2149_v8  ;;  %v2584_v21 = vld [vmem:[#allocation9 + $0x164] sm:$0xf0] }
  0x46   :  { %v2014_v17 = vor.u32 %v2552_v11, %v2013_v7  ;;  %v2550_v23 = vld [vmem:[#allocation9 + $0x54] sm:$0xf0]  ;;  %v2205_v24 = vld [vmem:[#allocation9 + $0x1e0] sm:$0xf]  ;;  %v2142_v28 = vor.u32 %v2584_v21, %v2141_v20  ;;  %v2133_v32 = vld [vmem:[#allocation9 + $0x150] sm:$0xf] }
  0x47   :  { %567 = vmatpush.bf16.msrb.mxu0 %v1902_v13  ;;  %580 = vmatpush.bf16.msrb.mxu1 %v1906_v14  ;;  %v2602_v13 = vld [vmem:[#allocation9 + $0x1f4] sm:$0xf0]  ;;  %v2077_v14 = vld [vmem:[#allocation9 + $0xe0] sm:$0xf]  ;;  %v2548_v35 = vld [vmem:[#allocation9 + $0x44] sm:$0xf0] }
  0x48   :  { %593 = vmatpush.bf16.msrb.mxu2 %v1910_v15  ;;  %v2568_v15 = vld [vmem:[#allocation9 + $0xe4] sm:$0xf0]  ;;  %v2214_v18 = vor.u32 %v2602_v13, %v2213_v12  ;;  %v2582_v33 = vld [vmem:[#allocation9 + $0x154] sm:$0xf0]  ;;  %v2197_v36 = vld [vmem:[#allocation9 + $0x1d0] sm:$0xf] }
  0x49   :  { %606 = vmatpush.bf16.msrb.mxu3 %v1914_v19  ;;  %v2005_v19 = vld [vmem:[#allocation9 + $0x50] sm:$0xf]  ;;  %v2078_v22 = vor.u32 %v2568_v15, %v2077_v14  ;;  %v2134_v40 = vor.u32 %v2582_v33, %v2133_v32  ;;  %v2580_v44 = vld [vmem:[#allocation9 + $0x144] sm:$0xf0]  ;;  %v2546_v46 = vld [vmem:[#allocation9 + $0x34] sm:$0xf0] }
  0x4a   :  { %v2006_v29 = vor.u32 %v2550_v23, %v2005_v19  ;;  %v1989_v42 = vld [vmem:[#allocation9 + $0x30] sm:$0xf]  ;;  %v2189_v47 = vld [vmem:[#allocation9 + $0x1c0] sm:$0xf]  ;;  %v2596_v48 = vld [vmem:[#allocation9 + $0x1c4] sm:$0xf0] }
  0x4b   :  { %568 = vmatpush.bf16.msrb.mxu0 %v1886_v25  ;;  %581 = vmatpush.bf16.msrb.mxu1 %v1890_v26  ;;  %v2600_v25 = vld [vmem:[#allocation9 + $0x1e4] sm:$0xf0]  ;;  %v2069_v26 = vld [vmem:[#allocation9 + $0xd0] sm:$0xf]  ;;  %v2562_v51 = vld [vmem:[#allocation9 + $0xb4] sm:$0xf0]  ;;  %v2190_v54 = vor.u32 %v2596_v48, %v2189_v47 }
  0x4c   :  { %594 = vmatpush.bf16.msrb.mxu2 %v1894_v27  ;;  %v2566_v27 = vld [vmem:[#allocation9 + $0xd4] sm:$0xf0]  ;;  %v2206_v30 = vor.u32 %v2600_v25, %v2205_v24  ;;  %v1981_v55 = vld [vmem:[#allocation9 + $0x20] sm:$0xf]  ;;  %v2117_v56 = vld [vmem:[#allocation9 + $0x130] sm:$0xf] }
  0x4d   :  { %607 = vmatpush.bf16.msrb.mxu3 %v1898_v31  ;;  %v1997_v31 = vld [vmem:[#allocation9 + $0x40] sm:$0xf]  ;;  %v2070_v34 = vor.u32 %v2566_v27, %v2069_v26  ;;  %v2544_v59 = vld [vmem:[#allocation9 + $0x24] sm:$0xf0]  ;;  %v2181_v60 = vld [vmem:[#allocation9 + $0x1b0] sm:$0xf] }
  0x4e   :  { %v2594_v61 = vld [vmem:[#allocation9 + $0x1b4] sm:$0xf0]  ;;  %v2045_v62 = vld [vmem:[#allocation9 + $0xa0] sm:$0xf]  ;;  %v2560_v63 = vld [vmem:[#allocation9 + $0xa4] sm:$0xf0]  ;;  %v1982_v1 = vor.u32 %v2544_v59, %v1981_v55 }
  0x4f   :  { %569 = vmatpush.bf16.msrb.mxu0 %v1870_v37  ;;  %582 = vmatpush.bf16.msrb.mxu1 %v1874_v38  ;;  %v2598_v37 = vld [vmem:[#allocation9 + $0x1d4] sm:$0xf0]  ;;  %v2061_v38 = vld [vmem:[#allocation9 + $0xc0] sm:$0xf]  ;;  %v2182_v2 = vor.u32 %v2594_v61, %v2181_v60  ;;  %v2592_v9 = vld [vmem:[#allocation9 + $0x1a4] sm:$0xf0] }
  0x50   :  { %595 = vmatpush.bf16.msrb.mxu2 %v1878_v39  ;;  %v2564_v39 = vld [vmem:[#allocation9 + $0xc4] sm:$0xf0]  ;;  %v2198_v41 = vor.u32 %v2598_v37, %v2197_v36  ;;  %v2542_v7 = vld [vmem:[#allocation9 + $0x14] sm:$0xf0]  ;;  %v2173_v8 = vld [vmem:[#allocation9 + $0x1a0] sm:$0xf] }
  0x51   :  { %608 = vmatpush.bf16.msrb.mxu3 %v1882_v43  ;;  %v2125_v43 = vld [vmem:[#allocation9 + $0x140] sm:$0xf]  ;;  %v2062_v45 = vor.u32 %v2564_v39, %v2061_v38  ;;  %v2558_v11 = vld [vmem:[#allocation9 + $0x94] sm:$0xf0]  ;;  %v2174_v15 = vor.u32 %v2592_v9, %v2173_v8  ;;  %v2165_v21 = vld [vmem:[#allocation9 + $0x190] sm:$0xf] }
  0x52   :  { %v1965_v13 = vld [vmem:[#allocation9] sm:$0xf]  ;;  %v2556_v23 = vld [vmem:[#allocation9 + $0x84] sm:$0xf0]  ;;  %v2277_v24 = vld [vmem:[#allocation9 + $0x270] sm:$0xf] }
  0x53   :  { %570 = vmatpush.bf16.msrb.mxu0 %v1854_v49  ;;  %583 = vmatpush.bf16.msrb.mxu1 %v1858_v52  ;;  %v2053_v49 = vld [vmem:[#allocation9 + $0xb0] sm:$0xf]  ;;  %v2126_v52 = vor.u32 %v2580_v44, %v2125_v43  ;;  %v2029_v20 = vld [vmem:[#allocation9 + $0x80] sm:$0xf]  ;;  %v2618_v25 = vld [vmem:[#allocation9 + $0x274] sm:$0xf0] }
  0x54   :  { %596 = vmatpush.bf16.msrb.mxu2 %v1862_v53  ;;  %v1990_v53 = vor.u32 %v2546_v46, %v1989_v42  ;;  %v2054_v58 = vor.u32 %v2562_v51, %v2053_v49  ;;  %v2341_v26 = vld [vmem:[#allocation9 + $0x2f0] sm:$0xf]  ;;  %v2634_v27 = vld [vmem:[#allocation9 + $0x2f4] sm:$0xf0]  ;;  %v2093_v32 = vld [vmem:[#allocation9 + $0x100] sm:$0xf]  ;;  %v2278_v36 = vor.u32 %v2618_v25, %v2277_v24 }
  0x55   :  { %609 = vmatpush.bf16.msrb.mxu3 %v1866_v57  ;;  %v2578_v57 = vld [vmem:[#allocation9 + $0x134] sm:$0xf0]  ;;  %v2572_v33 = vld [vmem:[#allocation9 + $0x104] sm:$0xf0]  ;;  %v2405_v38 = vld [vmem:[#allocation9 + $0x370] sm:$0xf] }
  0x56   :  { %v2588_v37 = vld [vmem:[#allocation9 + $0x184] sm:$0xf0]  ;;  %v2650_v39 = vld [vmem:[#allocation9 + $0x374] sm:$0xf0]  ;;  %v2333_v43 = vld [vmem:[#allocation9 + $0x2e0] sm:$0xf] }
  0x57   :  { %571 = vmatpush.bf16.msrb.mxu0 %v1838_v0  ;;  %584 = vmatpush.bf16.msrb.mxu1 %v1842_v3  ;;  %v2118_v0 = vor.u32 %v2578_v57, %v2117_v56  ;;  %v1973_v3 = vld [vmem:[#allocation9 + $0x10] sm:$0xf]  ;;  %v2666_v42 = vld [vmem:[#allocation9 + $0x3f4] sm:$0xf0]  ;;  %v2632_v44 = vld [vmem:[#allocation9 + $0x2e4] sm:$0xf0]  ;;  %v2406_v47 = vor.u32 %v2650_v39, %v2405_v38 }
  0x58   :  { %597 = vmatpush.bf16.msrb.mxu2 %v1846_v4  ;;  %v2109_v4 = vld [vmem:[#allocation9 + $0x120] sm:$0xf]  ;;  %v1974_v14 = vor.u32 %v2542_v7, %v1973_v3  ;;  %v2261_v51 = vld [vmem:[#allocation9 + $0x250] sm:$0xf]  ;;  %v2614_v55 = vld [vmem:[#allocation9 + $0x254] sm:$0xf0] }
  0x59   :  { %610 = vmatpush.bf16.msrb.mxu3 %v1850_v5  ;;  %v2576_v5 = vld [vmem:[#allocation9 + $0x124] sm:$0xf0]  ;;  %v2461_v56 = vld [vmem:[#allocation9 + $0x3e0] sm:$0xf]  ;;  %v2630_v59 = vld [vmem:[#allocation9 + $0x2d4] sm:$0xf0]  ;;  %v2262_v61 = vor.u32 %v2614_v55, %v2261_v51 }
  0x5a   :  { %572 = vmatmul.bf16.vlgmr.msrb.gmra.mxu0 %v2900_v50  ;;  %585 = vmatmul.bf16.vlgmr.msrb.gmra.mxu1 %v2900_v50  ;;  %v2110_v12 = vor.u32 %v2576_v5, %v2109_v4  ;;  %v2664_v57 = vld [vmem:[#allocation9 + $0x3e4] sm:$0xf0]  ;;  %v2453_v4 = vld [vmem:[#allocation9 + $0x3d0] sm:$0xf]  ;;  %v2662_v5 = vld [vmem:[#allocation9 + $0x3d4] sm:$0xf0] }
  0x5b   :  { %1430 = vmatpush.bf16.msra.mxu0 %v2022_v6  ;;  %1443 = vmatpush.bf16.msra.mxu1 %v2086_v10  ;;  %v2046_v6 = vor.u32 %v2560_v63, %v2045_v62  ;;  %v2037_v10 = vld [vmem:[#allocation9 + $0x90] sm:$0xf]  ;;  %v2462_v62 = vor.u32 %v2664_v57, %v2461_v56  ;;  %v2253_v63 = vld [vmem:[#allocation9 + $0x240] sm:$0xf]  ;;  %v2612_v3 = vld [vmem:[#allocation9 + $0x244] sm:$0xf0] }
  0x5c   :  { %598 = vmatmul.bf16.vlgmr.msrb.gmra.mxu2 %v2900_v50  ;;  %611 = vmatmul.bf16.vlgmr.msrb.gmra.mxu3 %v2900_v50  ;;  %v1998_v50 = vor.u32 %v2548_v35, %v1997_v31  ;;  %v2038_v19 = vor.u32 %v2558_v11, %v2037_v10  ;;  %v2269_v31 = vld [vmem:[#allocation9 + $0x260] sm:$0xf]  ;;  %v2030_v35 = vor.u32 %v2556_v23, %v2029_v20  ;;  %v2628_v7 = vld [vmem:[#allocation9 + $0x2c4] sm:$0xf0]  ;;  %v2293_v38 = vld [vmem:[#allocation9 + $0x290] sm:$0xf] }
  0x5d   :  { %1456 = vmatpush.bf16.msra.mxu2 %v2150_v16  ;;  %1469 = vmatpush.bf16.msra.mxu3 %v2214_v18  ;;  %v2540_v16 = vld [vmem:[#allocation9 + $0x4] sm:$0xf0]  ;;  %v2574_v18 = vld [vmem:[#allocation9 + $0x114] sm:$0xf0]  ;;  %v2254_v9 = vor.u32 %v2612_v3, %v2253_v63  ;;  %v2454_v10 = vor.u32 %v2662_v5, %v2453_v4  ;;  %v2445_v20 = vld [vmem:[#allocation9 + $0x3c0] sm:$0xf] }
  0x5e   :  { %v2237_v24 = vld [vmem:[#allocation9 + $0x220] sm:$0xf]  ;;  %v2608_v25 = vld [vmem:[#allocation9 + $0x224] sm:$0xf0]  ;;  %v2638_v55 = vld [vmem:[#allocation9 + $0x314] sm:$0xf0] }
  0x5f   :  { %1431 = vmatpush.bf16.msra.mxu0 %v2014_v17  ;;  %1444 = vmatpush.bf16.msra.mxu1 %v2078_v22  ;;  %v2101_v17 = vld [vmem:[#allocation9 + $0x110] sm:$0xf]  ;;  %v2590_v22 = vld [vmem:[#allocation9 + $0x194] sm:$0xf0]  ;;  %v2413_v63 = vld [vmem:[#allocation9 + $0x380] sm:$0xf] }
  0x60   :  { %v2421_v56 = vld [vmem:[#allocation9 + $0x390] sm:$0xf]  ;;  %v2654_v57 = vld [vmem:[#allocation9 + $0x394] sm:$0xf0]  ;;  %s2844_s28 = smov [#allocation12]   ;;  %s1695_s9 = sshll.u32 %s2964_s7, 4  ;;  %s1696_s9 = int_to_ptr.hbm [resolvable:$true] %s1695_s9 }
  0x61   :  { %1457 = vmatpush.bf16.msra.mxu2 %v2142_v28  ;;  %1470 = vmatpush.bf16.msra.mxu3 %v2206_v30  ;;  %v2102_v28 = vor.u32 %v2574_v18, %v2101_v17  ;;  %v2166_v30 = vor.u32 %v2590_v22, %v2165_v21  ;;  %v2381_v18 = vld [vmem:[#allocation9 + $0x340] sm:$0xf]  ;;  %v2660_v22 = vld [vmem:[#allocation9 + $0x3c4] sm:$0xf0]  ;;  %s1693_s29 = sshll.u32 %s2844_s28, 4  ;;  %s1694_s29 = int_to_ptr.vmem [resolvable:$true] %s1693_s29 }
  0x62   :  { %v2446_v23 = vor.u32 %v2660_v22, %v2445_v20  ;;  %v2087_v20 = vld [vmem:[#allocation9 + $0xf8] sm:$0xf0] }
  0x63   :  { %1432 = vmatpush.bf16.msra.mxu0 %v2006_v29  ;;  %1445 = vmatpush.bf16.msra.mxu1 %v2070_v34  ;;  %v1966_v29 = vor.u32 %v2540_v16, %v1965_v13  ;;  %v2157_v34 = vld [vmem:[#allocation9 + $0x180] sm:$0xf]  ;;  %v2610_v13 = vld [vmem:[#allocation9 + $0x234] sm:$0xf0] }
  0x64   :  { %v2158_v46 = vor.u32 %v2588_v37, %v2157_v34  ;;  %v2658_v34 = vld [vmem:[#allocation9 + $0x3b4] sm:$0xf0] }
  0x65   :  { %1458 = vmatpush.bf16.msra.mxu2 %v2134_v40  ;;  %1471 = vmatpush.bf16.msra.mxu3 %v2198_v41  ;;  %v2342_v40 = vor.u32 %v2634_v27, %v2341_v26  ;;  %v2469_v41 = vld [vmem:[#allocation9 + $0x3f0] sm:$0xf]  ;;  %v2238_v26 = vor.u32 %v2608_v25, %v2237_v24  ;;  %v2301_v27 = vld [vmem:[#allocation9 + $0x2a0] sm:$0xf]  ;;  %v2606_v37 = vld [vmem:[#allocation9 + $0x214] sm:$0xf0] }
  0x66   :  { %v2470_v49 = vor.u32 %v2666_v42, %v2469_v41  ;;  %v2365_v41 = vld [vmem:[#allocation9 + $0x320] sm:$0xf]  ;;  %v2640_v42 = vld [vmem:[#allocation9 + $0x324] sm:$0xf0] }
  0x67   :  { %1433 = vmatpush.bf16.msra.mxu0 %v1998_v50  ;;  %1446 = vmatpush.bf16.msra.mxu1 %v2062_v45  ;;  %v2616_v50 = vld [vmem:[#allocation9 + $0x264] sm:$0xf0]  ;;  %v2094_v45 = vor.u32 %v2572_v33, %v2093_v32  ;;  %v2437_v32 = vld [vmem:[#allocation9 + $0x3b0] sm:$0xf] }
  0x68   :  { %v2270_v48 = vor.u32 %v2616_v50, %v2269_v31  ;;  %v2642_v31 = vld [vmem:[#allocation9 + $0x334] sm:$0xf0] }
  0x69   :  { %1459 = vmatpush.bf16.msra.mxu2 %v2126_v52  ;;  %1472 = vmatpush.bf16.msra.mxu3 %v2190_v54  ;;  %v2397_v52 = vld [vmem:[#allocation9 + $0x360] sm:$0xf]  ;;  %v2334_v54 = vor.u32 %v2632_v44, %v2333_v43  ;;  %v2366_v44 = vor.u32 %v2640_v42, %v2365_v41 }
  0x6a   :  { %v2429_v43 = vld [vmem:[#allocation9 + $0x3a0] sm:$0xf] }
  0x6b   :  { %1434 = vmatpush.bf16.msra.mxu0 %v1990_v53  ;;  %1447 = vmatpush.bf16.msra.mxu1 %v2054_v58  ;;  %v2648_v53 = vld [vmem:[#allocation9 + $0x364] sm:$0xf0]  ;;  %v2325_v58 = vld [vmem:[#allocation9 + $0x2d0] sm:$0xf] }
  0x6c   :  { %v2398_v60 = vor.u32 %v2648_v53, %v2397_v52  ;;  %v2620_v52 = vld [vmem:[#allocation9 + $0x284] sm:$0xf0] }
  0x6d   :  { %1460 = vmatpush.bf16.msra.mxu2 %v2118_v0  ;;  %1473 = vmatpush.bf16.msra.mxu3 %v2182_v2  ;;  %v2389_v0 = vld [vmem:[#allocation9 + $0x350] sm:$0xf]  ;;  %v2326_v2 = vor.u32 %v2630_v59, %v2325_v58  ;;  %v2422_v59 = vor.u32 %v2654_v57, %v2421_v56  ;;  %v2143_v56 = vld [vmem:[#allocation9 + $0x168] sm:$0xf0]  ;;  %v2599_v57 = vld [vmem:[#allocation9 + $0x1e4] sm:$0xf] }
  0x6f   :  { %1435 = vmatpush.bf16.msra.mxu0 %v1982_v1  ;;  %1448 = vmatpush.bf16.msra.mxu1 %v2046_v6  ;;  %v2646_v1 = vld [vmem:[#allocation9 + $0x354] sm:$0xf0]  ;;  %v2317_v6 = vld [vmem:[#allocation9 + $0x2c0] sm:$0xf] }
  0x70   :  { %v2390_v8 = vor.u32 %v2646_v1, %v2389_v0  ;;  %v2318_v11 = vor.u32 %v2628_v7, %v2317_v6  ;;  %v2652_v0 = vld [vmem:[#allocation9 + $0x384] sm:$0xf0] }
  0x71   :  { %1461 = vmatpush.bf16.msra.mxu2 %v2110_v12  ;;  %1474 = vmatpush.bf16.msra.mxu3 %v2174_v15  ;;  %v2245_v12 = vld [vmem:[#allocation9 + $0x230] sm:$0xf]  ;;  %v2626_v15 = vld [vmem:[#allocation9 + $0x2b4] sm:$0xf0]  ;;  %v2414_v1 = vor.u32 %v2652_v0, %v2413_v63  ;;  %v2563_v63 = vld [vmem:[#allocation9 + $0xc4] sm:$0xf] }
  0x72   :  { %v2246_v16 = vor.u32 %v2610_v13, %v2245_v12  ;;  %v2063_v0 = vld [vmem:[#allocation9 + $0xc8] sm:$0xf0] }
  0x73   :  { %1436 = vmatpush.bf16.msra.mxu0 %v1974_v14  ;;  %1449 = vmatpush.bf16.msra.mxu1 %v2038_v19  ;;  %v2309_v14 = vld [vmem:[#allocation9 + $0x2b0] sm:$0xf]  ;;  %v2644_v19 = vld [vmem:[#allocation9 + $0x344] sm:$0xf0] }
  0x74   :  { %v2310_v17 = vor.u32 %v2626_v15, %v2309_v14  ;;  %v2382_v21 = vor.u32 %v2644_v19, %v2381_v18  ;;  %v2553_v14 = vld [vmem:[#allocation9 + $0x74] sm:$0xf]  ;;  %v2023_v18 = vld [vmem:[#allocation9 + $0x78] sm:$0xf0] }
  0x75   :  { %1462 = vmatpush.bf16.msra.mxu2 %v2102_v28  ;;  %1475 = vmatpush.bf16.msra.mxu3 %v2166_v30  ;;  %v2624_v28 = vld [vmem:[#allocation9 + $0x2a4] sm:$0xf0]  ;;  %v2373_v30 = vld [vmem:[#allocation9 + $0x330] sm:$0xf]  ;;  %v2569_v19 = vld [vmem:[#allocation9 + $0xf4] sm:$0xf] }
  0x76   :  { %v2374_v33 = vor.u32 %v2642_v31, %v2373_v30  ;;  %v2551_v30 = vld [vmem:[#allocation9 + $0x64] sm:$0xf] }
  0x77   :  { %1437 = vmatpush.bf16.msra.mxu0 %v1966_v29  ;;  %1450 = vmatpush.bf16.msra.mxu1 %v2030_v35  ;;  %v2302_v29 = vor.u32 %v2624_v28, %v2301_v27  ;;  %v2438_v35 = vor.u32 %v2658_v34, %v2437_v32  ;;  %v2026_v28 = vor.u32 %v2553_v14, %v2023_v18  ;;  %v2567_v34 = vld [vmem:[#allocation9 + $0xe4] sm:$0xf] }
  0x78   :  { %v2595_v18 = vld [vmem:[#allocation9 + $0x1c4] sm:$0xf] }
  0x79   :  { %1463 = vmatpush.bf16.msra.mxu2 %v2094_v45  ;;  %1476 = vmatpush.bf16.msra.mxu3 %v2158_v46  ;;  %v2656_v45 = vld [vmem:[#allocation9 + $0x3a4] sm:$0xf0] }
  0x7a   :  { %v2430_v46 = vor.u32 %v2656_v45, %v2429_v43  ;;  %v2549_v45 = vld [vmem:[#allocation9 + $0x54] sm:$0xf] }
  0x7b   :  { %1482 = vmatpush.bf16.msrb.mxu0 %v2278_v36  ;;  %1495 = vmatpush.bf16.msrb.mxu1 %v2342_v40  ;;  %v2229_v36 = vld [vmem:[#allocation9 + $0x210] sm:$0xf]  ;;  %v2622_v40 = vld [vmem:[#allocation9 + $0x294] sm:$0xf0] }
  0x7c   :  { %v2230_v39 = vor.u32 %v2606_v37, %v2229_v36  ;;  %v2294_v50 = vor.u32 %v2622_v40, %v2293_v38  ;;  %v2585_v37 = vld [vmem:[#allocation9 + $0x174] sm:$0xf]  ;;  %v2151_v38 = vld [vmem:[#allocation9 + $0x178] sm:$0xf0] }
  0x7d   :  { %1508 = vmatpush.bf16.msrb.mxu2 %v2406_v47  ;;  %1521 = vmatpush.bf16.msrb.mxu3 %v2470_v49  ;;  %v2221_v47 = vld [vmem:[#allocation9 + $0x200] sm:$0xf]  ;;  %v2215_v40 = vld [vmem:[#allocation9 + $0x1f8] sm:$0xf0] }
  0x7e   :  { %v2285_v49 = vld [vmem:[#allocation9 + $0x280] sm:$0xf] }
  0x7f   :  { %1483 = vmatpush.bf16.msrb.mxu0 %v2270_v48  ;;  %1496 = vmatpush.bf16.msrb.mxu1 %v2334_v54  ;;  %v2604_v48 = vld [vmem:[#allocation9 + $0x204] sm:$0xf0]  ;;  %v2286_v53 = vor.u32 %v2620_v52, %v2285_v49  ;;  %v2357_v54 = vld [vmem:[#allocation9 + $0x310] sm:$0xf]  ;;  %v2071_v49 = vld [vmem:[#allocation9 + $0xd8] sm:$0xf0] }
  0x80   :  { %v2222_v51 = vor.u32 %v2604_v48, %v2221_v47  ;;  %v2358_v58 = vor.u32 %v2638_v55, %v2357_v54  ;;  %v2007_v47 = vld [vmem:[#allocation9 + $0x58] sm:$0xf0]  ;;  %v2565_v48 = vld [vmem:[#allocation9 + $0xd4] sm:$0xf]  ;;  %v2583_v55 = vld [vmem:[#allocation9 + $0x164] sm:$0xf] }
  0x81   :  { %1509 = vmatpush.bf16.msrb.mxu2 %v2398_v60  ;;  %1522 = vmatpush.bf16.msrb.mxu3 %v2462_v62  ;;  %v2349_v60 = vld [vmem:[#allocation9 + $0x300] sm:$0xf] }
  0x83   :  { %1484 = vmatpush.bf16.msrb.mxu0 %v2262_v61  ;;  %1497 = vmatpush.bf16.msrb.mxu1 %v2326_v2  ;;  %v2636_v61 = vld [vmem:[#allocation9 + $0x304] sm:$0xf0]  ;;  %v132_v2 = vld [vmem:[#allocation8] sm:$0xf] }
  0x84   :  { %v2350_v62 = vor.u32 %v2636_v61, %v2349_v60  ;;  %v134_v3 = vperm.slane %v132_v2, 0  ;;  %v135_v4 = vperm.slane %v132_v2, 1  ;;  %v2074_v60 = vor.u32 %v2565_v48, %v2071_v49  ;;  %v2547_v61 = vld [vmem:[#allocation9 + $0x44] sm:$0xf] }
  0x85   :  { %1510 = vmatpush.bf16.msrb.mxu2 %v2390_v8  ;;  %1523 = vmatpush.bf16.msrb.mxu3 %v2454_v10  ;;  %v2575_v49 = vld [vmem:[#allocation9 + $0x124] sm:$0xf] }
  0x87   :  { %1485 = vmatpush.bf16.msrb.mxu0 %v2254_v9  ;;  %1498 = vmatpush.bf16.msrb.mxu1 %v2318_v11  ;;  %v136_v9 = vperm.slane %v132_v2, 2  ;;  %v137_v11 = vperm.slane %v132_v2, 3 }
  0x89   :  { %1511 = vmatpush.bf16.msrb.mxu2 %v2382_v21  ;;  %1524 = vmatpush.bf16.msrb.mxu3 %v2446_v23 }
  0x8b   :  { %1486 = vmatpush.bf16.msrb.mxu0 %v2246_v16  ;;  %1499 = vmatpush.bf16.msrb.mxu1 %v2310_v17 }
  0x8d   :  { %1512 = vmatpush.bf16.msrb.mxu2 %v2374_v33  ;;  %1525 = vmatpush.bf16.msrb.mxu3 %v2438_v35  ;;  %v2015_v33 = vld [vmem:[#allocation9 + $0x68] sm:$0xf0] }
  0x8e   :  { %v2079_v35 = vld [vmem:[#allocation9 + $0xe8] sm:$0xf0]  ;;  %v2018_v43 = vor.u32 %v2551_v30, %v2015_v33  ;;  %v2577_v30 = vld [vmem:[#allocation9 + $0x134] sm:$0xf] }
  0x8f   :  { %1487 = vmatpush.bf16.msrb.mxu0 %v2238_v26  ;;  %1500 = vmatpush.bf16.msrb.mxu1 %v2302_v29  ;;  %v2090_v29 = vor.u32 %v2569_v19, %v2087_v20  ;;  %v2191_v19 = vld [vmem:[#allocation9 + $0x1c8] sm:$0xf0] }
  0x91   :  { %1513 = vmatpush.bf16.msrb.mxu2 %v2366_v44  ;;  %1526 = vmatpush.bf16.msrb.mxu3 %v2430_v46  ;;  %v2082_v44 = vor.u32 %v2567_v34, %v2079_v35  ;;  %v2119_v34 = vld [vmem:[#allocation9 + $0x138] sm:$0xf0]  ;;  %v2593_v35 = vld [vmem:[#allocation9 + $0x1b4] sm:$0xf] }
  0x93   :  { %1488 = vmatpush.bf16.msrb.mxu0 %v2230_v39  ;;  %1501 = vmatpush.bf16.msrb.mxu1 %v2294_v50  ;;  %v2601_v39 = vld [vmem:[#allocation9 + $0x1f4] sm:$0xf] }
  0x94   :  { %v2218_v54 = vor.u32 %v2601_v39, %v2215_v40 }
  0x95   :  { %1514 = vmatpush.bf16.msrb.mxu2 %v2358_v58  ;;  %1527 = vmatpush.bf16.msrb.mxu3 %v2422_v59  ;;  %v2207_v58 = vld [vmem:[#allocation9 + $0x1e8] sm:$0xf0]  ;;  %v2010_v59 = vor.u32 %v2549_v45, %v2007_v47 }
  0x96   :  { %v2210_v2 = vor.u32 %v2599_v57, %v2207_v58  ;;  %v2175_v57 = vld [vmem:[#allocation9 + $0x1a8] sm:$0xf0] }
  0x97   :  { %1489 = vmatpush.bf16.msrb.mxu0 %v2222_v51  ;;  %1502 = vmatpush.bf16.msrb.mxu1 %v2286_v53  ;;  %v2154_v53 = vor.u32 %v2585_v37, %v2151_v38 }
  0x99   :  { %1515 = vmatpush.bf16.msrb.mxu2 %v2350_v62  ;;  %1528 = vmatpush.bf16.msrb.mxu3 %v2414_v1  ;;  %v1999_v62 = vld [vmem:[#allocation9 + $0x48] sm:$0xf0]  ;;  %v2146_v1 = vor.u32 %v2583_v55, %v2143_v56  ;;  %v2591_v56 = vld [vmem:[#allocation9 + $0x1a4] sm:$0xf] }
  0xb7   :  { %v311_v5 = vpop.f32.mrf.mxu0  ;;  %v324_v7 = vpop.f32.mrf.mxu1 }
  0xb8   :  { %v312_v6 = vadd.f32 %v311_v5, %v134_v3  ;;  %v325_v8 = vadd.f32 %v324_v7, %v135_v4  ;;  %v2581_v3 = vld [vmem:[#allocation9 + $0x154] sm:$0xf]  ;;  %v2135_v4 = vld [vmem:[#allocation9 + $0x158] sm:$0xf0]  ;;  %v2002_v7 = vor.u32 %v2547_v61, %v1999_v62  ;;  %v1967_v61 = vld [vmem:[#allocation9 + $0x8] sm:$0xf0] }
  0xb9   :  { %v2597_v5 = vld [vmem:[#allocation9 + $0x1d4] sm:$0xf]  ;;  %v2138_v14 = vor.u32 %v2581_v3, %v2135_v4  ;;  %v2555_v62 = vld [vmem:[#allocation9 + $0x84] sm:$0xf] }
  0xba   :  { %v354_v10 = vmax.f32 %v312_v6, 0.0  ;;  %v355_v12 = vmax.f32 %v325_v8, 0.0  ;;  %v2199_v6 = vld [vmem:[#allocation9 + $0x1d8] sm:$0xf0]  ;;  %v2066_v8 = vor.u32 %v2563_v63, %v2063_v0  ;;  %v2031_v0 = vld [vmem:[#allocation9 + $0x88] sm:$0xf0] }
  0xbc   :  { %v358_v15 = vpack.c.bf16 %v355_v12, %v354_v10  ;;  %v1991_v10 = vld [vmem:[#allocation9 + $0x38] sm:$0xf0] }
  0xbd   :  { %v2055_v12 = vld [vmem:[#allocation9 + $0xb8] sm:$0xf0] }
  0xbe   :  { %v766_v22 = vunpack.c.l.b16 %v358_v15  ;;  %v767_v23 = vunpack.c.h.b16 %v358_v15  ;;  %v2202_v15 = vor.u32 %v2597_v5, %v2199_v6  ;;  %v2178_v5 = vor.u32 %v2591_v56, %v2175_v57  ;;  %v2633_v6 = vld [vmem:[#allocation9 + $0x2f4] sm:$0xf] }
  0xbf   :  { %v350_v17 = vpop.f32.mrf.mxu3  ;;  %v313_v25 = vpop.f32.mrf.mxu0 }
  0xc0   :  { %v337_v13 = vpop.f32.mrf.mxu2  ;;  %v351_v21 = vadd.f32 %v350_v17, %v137_v11  ;;  %v326_v27 = vpop.f32.mrf.mxu1  ;;  %v2910_v31 = vpack.c.b16 %v766_v22, %v766_v22  ;;  %v2912_v32 = vpack.c.b16 %v767_v23, %v767_v23  ;;  %v2561_v11 = vld [vmem:[#allocation9 + $0xb4] sm:$0xf]  ;;  %v2127_v17 = vld [vmem:[#allocation9 + $0x148] sm:$0xf0] }
  0xc1   :  { %v338_v16 = vadd.f32 %v337_v13, %v136_v9  ;;  %v2545_v9 = vld [vmem:[#allocation9 + $0x34] sm:$0xf]  ;;  %v2922_v13 = vld [vmem:[#allocation8 + $0x4] sm:$0xf]  ;;  %v1983_v25 = vld [vmem:[#allocation9 + $0x28] sm:$0xf0] }
  0xc2   :  { %v357_v26 = vmax.f32 %v351_v21, 0.0  ;;  %1438 = vmatmul.bf16.vlgmr.msra.gmra.mxu0 %v2910_v31  ;;  %1451 = vmatmul.bf16.vlgmr.msra.gmra.mxu1 %v2912_v32  ;;  %v1994_v20 = vor.u32 %v2545_v9, %v1991_v10  ;;  %v2058_v21 = vor.u32 %v2561_v11, %v2055_v12  ;;  %v396_v22 = vperm.slane %v2922_v13, 0  ;;  %v2047_v27 = vld [vmem:[#allocation9 + $0xa8] sm:$0xf0] }
  0xc3   :  { %v356_v24 = vmax.f32 %v338_v16, 0.0  ;;  %1534 = vmatpush.bf16.msra.mxu0 %v2026_v28  ;;  %1547 = vmatpush.bf16.msra.mxu1 %v2090_v29  ;;  %v2579_v16 = vld [vmem:[#allocation9 + $0x144] sm:$0xf]  ;;  %v397_v23 = vperm.slane %v2922_v13, 1  ;;  %v2194_v29 = vor.u32 %v2595_v18, %v2191_v19  ;;  %v398_v48 = vperm.slane %v2922_v13, 2 }
  0xc4   :  { %v2130_v28 = vor.u32 %v2579_v16, %v2127_v17  ;;  %v399_v55 = vperm.slane %v2922_v13, 3  ;;  %v2589_v16 = vld [vmem:[#allocation9 + $0x194] sm:$0xf]  ;;  %v2167_v17 = vld [vmem:[#allocation9 + $0x198] sm:$0xf0] }
  0xc5   :  { %v359_v36 = vpack.c.bf16 %v357_v26, %v356_v24  ;;  %v2543_v24 = vld [vmem:[#allocation9 + $0x24] sm:$0xf] }
  0xc6   :  { %v2559_v26 = vld [vmem:[#allocation9 + $0xa4] sm:$0xf]  ;;  %v1986_v39 = vor.u32 %v2543_v24, %v1983_v25 }
  0xc7   :  { %v768_v50 = vunpack.c.l.b16 %v359_v36  ;;  %v769_v41 = vunpack.c.h.b16 %v359_v36  ;;  %v352_v46 = vpop.f32.mrf.mxu3  ;;  %1535 = vmatpush.bf16.msra.mxu0 %v2018_v43  ;;  %1548 = vmatpush.bf16.msra.mxu1 %v2082_v44  ;;  %v2183_v36 = vld [vmem:[#allocation9 + $0x1b8] sm:$0xf0]  ;;  %v2050_v40 = vor.u32 %v2559_v26, %v2047_v27  ;;  %v2557_v43 = vld [vmem:[#allocation9 + $0x94] sm:$0xf]  ;;  %v2615_v26 = vld [vmem:[#allocation9 + $0x264] sm:$0xf] }
  0xc8   :  { %v339_v42 = vpop.f32.mrf.mxu2  ;;  %v2039_v44 = vld [vmem:[#allocation9 + $0x98] sm:$0xf0]  ;;  %v2122_v46 = vor.u32 %v2577_v30, %v2119_v34  ;;  %v2186_v47 = vor.u32 %v2593_v35, %v2183_v36  ;;  %v2271_v27 = vld [vmem:[#allocation9 + $0x268] sm:$0xf0]  ;;  %v2170_v30 = vor.u32 %v2589_v16, %v2167_v17  ;;  %v2571_v35 = vld [vmem:[#allocation9 + $0x104] sm:$0xf] }
  0xc9   :  { %v2916_v51 = vpack.c.b16 %v768_v50, %v768_v50  ;;  %v2918_v52 = vpack.c.b16 %v769_v41, %v769_v41  ;;  %v2541_v50 = vld [vmem:[#allocation9 + $0x14] sm:$0xf]  ;;  %v1975_v42 = vld [vmem:[#allocation9 + $0x18] sm:$0xf0]  ;;  %v2335_v34 = vld [vmem:[#allocation9 + $0x2e8] sm:$0xf0] }
  0xca   :  { %v1978_v58 = vor.u32 %v2541_v50, %v1975_v42  ;;  %v2095_v36 = vld [vmem:[#allocation9 + $0x108] sm:$0xf0]  ;;  %v2407_v50 = vld [vmem:[#allocation9 + $0x378] sm:$0xf0]  ;;  %v2609_v16 = vld [vmem:[#allocation9 + $0x234] sm:$0xf] }
  0xcb   :  { %1464 = vmatmul.bf16.vlgmr.msra.gmra.mxu2 %v2916_v51  ;;  %1477 = vmatmul.bf16.vlgmr.msra.gmra.mxu3 %v2918_v52  ;;  %v2098_v56 = vor.u32 %v2571_v35, %v2095_v36  ;;  %v2247_v17 = vld [vmem:[#allocation9 + $0x238] sm:$0xf0]  ;;  %v2303_v35 = vld [vmem:[#allocation9 + $0x2a8] sm:$0xf0] }
  0xcc   :  { %1560 = vmatpush.bf16.msra.mxu2 %v2154_v53  ;;  %1573 = vmatpush.bf16.msra.mxu3 %v2218_v54  ;;  %v2111_v53 = vld [vmem:[#allocation9 + $0x128] sm:$0xf0] }
  0xcd   :  { %1536 = vmatpush.bf16.msra.mxu0 %v2010_v59  ;;  %1549 = vmatpush.bf16.msra.mxu1 %v2074_v60  ;;  %v2042_v59 = vor.u32 %v2557_v43, %v2039_v44  ;;  %v2539_v60 = vld [vmem:[#allocation9 + $0x4] sm:$0xf]  ;;  %v2114_v4 = vor.u32 %v2575_v49, %v2111_v53  ;;  %v2665_v43 = vld [vmem:[#allocation9 + $0x3f4] sm:$0xf]  ;;  %v2471_v44 = vld [vmem:[#allocation9 + $0x3f8] sm:$0xf0] }
  0xce   :  { %v2263_v49 = vld [vmem:[#allocation9 + $0x258] sm:$0xf0]  ;;  %v2629_v53 = vld [vmem:[#allocation9 + $0x2d4] sm:$0xf] }
  0xd0   :  { %1561 = vmatpush.bf16.msra.mxu2 %v2146_v1  ;;  %1574 = vmatpush.bf16.msra.mxu3 %v2210_v2  ;;  %v2617_v1 = vld [vmem:[#allocation9 + $0x274] sm:$0xf]  ;;  %v2279_v2 = vld [vmem:[#allocation9 + $0x278] sm:$0xf0] }
  0xd1   :  { %1537 = vmatpush.bf16.msra.mxu0 %v2002_v7  ;;  %1550 = vmatpush.bf16.msra.mxu1 %v2066_v8  ;;  %v2343_v7 = vld [vmem:[#allocation9 + $0x2f8] sm:$0xf0]  ;;  %v2573_v8 = vld [vmem:[#allocation9 + $0x114] sm:$0xf] }
  0xd2   :  { %v2346_v25 = vor.u32 %v2633_v6, %v2343_v7  ;;  %v2627_v6 = vld [vmem:[#allocation9 + $0x2c4] sm:$0xf]  ;;  %v2319_v7 = vld [vmem:[#allocation9 + $0x2c8] sm:$0xf0] }
  0xd4   :  { %1562 = vmatpush.bf16.msra.mxu2 %v2138_v14  ;;  %1575 = vmatpush.bf16.msra.mxu3 %v2202_v15  ;;  %v1970_v14 = vor.u32 %v2539_v60, %v1967_v61  ;;  %v2103_v15 = vld [vmem:[#allocation9 + $0x118] sm:$0xf0]  ;;  %v2474_v61 = vor.u32 %v2665_v43, %v2471_v44  ;;  %v2605_v43 = vld [vmem:[#allocation9 + $0x214] sm:$0xf] }
  0xd5   :  { %1538 = vmatpush.bf16.msra.mxu0 %v1994_v20  ;;  %1551 = vmatpush.bf16.msra.mxu1 %v2058_v21  ;;  %v2034_v20 = vor.u32 %v2555_v62, %v2031_v0  ;;  %v2282_v21 = vor.u32 %v2617_v1, %v2279_v2  ;;  %v2647_v62 = vld [vmem:[#allocation9 + $0x364] sm:$0xf]  ;;  %v2231_v44 = vld [vmem:[#allocation9 + $0x218] sm:$0xf0] }
  0xd6   :  { %v2663_v2 = vld [vmem:[#allocation9 + $0x3e4] sm:$0xf] }
  0xd7   :  { %v573_v33 = vpop.f32.mrf.mxu0  ;;  %v586_v38 = vpop.f32.mrf.mxu1 }
  0xd8   :  { %v574_v37 = vadd.f32 %v573_v33, %v396_v22  ;;  %v587_v41 = vadd.f32 %v586_v38, %v397_v23  ;;  %1563 = vmatpush.bf16.msra.mxu2 %v2130_v28  ;;  %1576 = vmatpush.bf16.msra.mxu3 %v2194_v29  ;;  %v2106_v29 = vor.u32 %v2573_v8, %v2103_v15  ;;  %v2631_v33 = vld [vmem:[#allocation9 + $0x2e4] sm:$0xf]  ;;  %v2455_v15 = vld [vmem:[#allocation9 + $0x3d8] sm:$0xf0] }
  0xd9   :  { %1539 = vmatpush.bf16.msra.mxu0 %v1986_v39  ;;  %1552 = vmatpush.bf16.msra.mxu1 %v2050_v40  ;;  %v2159_v39 = vld [vmem:[#allocation9 + $0x188] sm:$0xf0]  ;;  %v2649_v40 = vld [vmem:[#allocation9 + $0x374] sm:$0xf]  ;;  %v2338_v42 = vor.u32 %v2631_v33, %v2335_v34  ;;  %v2623_v34 = vld [vmem:[#allocation9 + $0x2a4] sm:$0xf] }
  0xda   :  { %v616_v45 = vmax.f32 %v574_v37, 0.0  ;;  %v617_v54 = vmax.f32 %v587_v41, 0.0  ;;  %v2587_v37 = vld [vmem:[#allocation9 + $0x184] sm:$0xf]  ;;  %v2274_v41 = vor.u32 %v2615_v26, %v2271_v27  ;;  %v2410_v60 = vor.u32 %v2649_v40, %v2407_v50  ;;  %v2239_v33 = vld [vmem:[#allocation9 + $0x228] sm:$0xf0] }
  0xdb   :  { %v2162_v57 = vor.u32 %v2587_v37, %v2159_v39  ;;  %v2250_v26 = vor.u32 %v2609_v16, %v2247_v17  ;;  %v2375_v39 = vld [vmem:[#allocation9 + $0x338] sm:$0xf0]  ;;  %v2306_v50 = vor.u32 %v2623_v34, %v2303_v35 }
  0xdc   :  { %v620_v63 = vpack.c.bf16 %v617_v54, %v616_v45  ;;  %1564 = vmatpush.bf16.msra.mxu2 %v2122_v46  ;;  %1577 = vmatpush.bf16.msra.mxu3 %v2186_v47  ;;  %v2613_v45 = vld [vmem:[#allocation9 + $0x254] sm:$0xf]  ;;  %v2327_v54 = vld [vmem:[#allocation9 + $0x2d8] sm:$0xf0] }
  0xdd   :  { %1540 = vmatpush.bf16.msra.mxu0 %v1978_v58  ;;  %1553 = vmatpush.bf16.msra.mxu1 %v2042_v59  ;;  %v2266_v0 = vor.u32 %v2613_v45, %v2263_v49  ;;  %v2330_v1 = vor.u32 %v2629_v53, %v2327_v54  ;;  %v2621_v45 = vld [vmem:[#allocation9 + $0x294] sm:$0xf]  ;;  %v2234_v49 = vor.u32 %v2605_v43, %v2231_v44  ;;  %v2655_v54 = vld [vmem:[#allocation9 + $0x3a4] sm:$0xf] }
  0xde   :  { %v770_v9 = vunpack.c.l.b16 %v620_v63  ;;  %v771_v10 = vunpack.c.h.b16 %v620_v63  ;;  %v2399_v63 = vld [vmem:[#allocation9 + $0x368] sm:$0xf0] }
  0xdf   :  { %v599_v3 = vpop.f32.mrf.mxu2  ;;  %v612_v12 = vpop.f32.mrf.mxu3  ;;  %v2402_v8 = vor.u32 %v2647_v62, %v2399_v63 }
  0xe0   :  { %v600_v11 = vadd.f32 %v599_v3, %v398_v48  ;;  %v575_v13 = vpop.f32.mrf.mxu0  ;;  %v613_v18 = vadd.f32 %v612_v12, %v399_v55  ;;  %v588_v19 = vpop.f32.mrf.mxu1  ;;  %v2928_v22 = vpack.c.b16 %v770_v9, %v770_v9  ;;  %v2930_v23 = vpack.c.b16 %v771_v10, %v771_v10  ;;  %1565 = vmatpush.bf16.msra.mxu2 %v2114_v4  ;;  %v2463_v3 = vld [vmem:[#allocation9 + $0x3e8] sm:$0xf0]  ;;  %v2611_v4 = vld [vmem:[#allocation9 + $0x244] sm:$0xf]  ;;  %v2645_v10 = vld [vmem:[#allocation9 + $0x354] sm:$0xf] }
  0xe1   :  { %1578 = vmatpush.bf16.msra.mxu3 %v2178_v5  ;;  %1541 = vmatpush.bf16.msra.mxu0 %v1970_v14  ;;  %v2255_v5 = vld [vmem:[#allocation9 + $0x248] sm:$0xf0]  ;;  %v2466_v9 = vor.u32 %v2663_v2, %v2463_v3  ;;  %v2322_v13 = vor.u32 %v2627_v6, %v2319_v7  ;;  %v2661_v14 = vld [vmem:[#allocation9 + $0x3d4] sm:$0xf]  ;;  %v2311_v19 = vld [vmem:[#allocation9 + $0x2b8] sm:$0xf0] }
  0xe2   :  { %v618_v24 = vmax.f32 %v600_v11, 0.0  ;;  %v619_v28 = vmax.f32 %v613_v18, 0.0  ;;  %1490 = vmatmul.bf16.vlgmr.msrb.gmra.mxu0 %v2928_v22  ;;  %1503 = vmatmul.bf16.vlgmr.msrb.gmra.mxu1 %v2930_v23  ;;  %v2391_v11 = vld [vmem:[#allocation9 + $0x358] sm:$0xf0]  ;;  %v2258_v12 = vor.u32 %v2611_v4, %v2255_v5  ;;  %v2625_v18 = vld [vmem:[#allocation9 + $0x2b4] sm:$0xf] }
  0xe3   :  { %1554 = vmatpush.bf16.msra.mxu1 %v2034_v20  ;;  %v2394_v20 = vor.u32 %v2645_v10, %v2391_v11  ;;  %v2314_v27 = vor.u32 %v2625_v18, %v2311_v19  ;;  %v2359_v3 = vld [vmem:[#allocation9 + $0x318] sm:$0xf0]  ;;  %v2653_v4 = vld [vmem:[#allocation9 + $0x394] sm:$0xf]  ;;  %v2351_v7 = vld [vmem:[#allocation9 + $0x308] sm:$0xf0] }
  0xe4   :  { %v621_v38 = vpack.c.bf16 %v619_v28, %v618_v24  ;;  %1566 = vmatpush.bf16.msra.mxu2 %v2106_v29  ;;  %v2643_v24 = vld [vmem:[#allocation9 + $0x344] sm:$0xf]  ;;  %v2447_v29 = vld [vmem:[#allocation9 + $0x3c8] sm:$0xf0]  ;;  %v2423_v5 = vld [vmem:[#allocation9 + $0x398] sm:$0xf0] }
  0xe5   :  { %1586 = vmatpush.bf16.msrb.mxu0 %v2282_v21  ;;  %1579 = vmatpush.bf16.msra.mxu3 %v2170_v30  ;;  %v2458_v21 = vor.u32 %v2661_v14, %v2455_v15  ;;  %v2659_v28 = vld [vmem:[#allocation9 + $0x3c4] sm:$0xf]  ;;  %v2426_v6 = vor.u32 %v2653_v4, %v2423_v5 }
  0xe6   :  { %v772_v46 = vunpack.c.l.b16 %v621_v38  ;;  %v773_v47 = vunpack.c.h.b16 %v621_v38  ;;  %v2607_v30 = vld [vmem:[#allocation9 + $0x224] sm:$0xf]  ;;  %v2450_v37 = vor.u32 %v2659_v28, %v2447_v29  ;;  %v2641_v38 = vld [vmem:[#allocation9 + $0x334] sm:$0xf] }
  0xe7   :  { %1599 = vmatpush.bf16.msrb.mxu1 %v2346_v25  ;;  %v601_v48 = vpop.f32.mrf.mxu2  ;;  %v614_v55 = vpop.f32.mrf.mxu3  ;;  %v2383_v25 = vld [vmem:[#allocation9 + $0x348] sm:$0xf0]  ;;  %v2242_v40 = vor.u32 %v2607_v30, %v2239_v33 }
  0xe8   :  { %v2934_v58 = vpack.c.b16 %v772_v46, %v772_v46  ;;  %v2936_v59 = vpack.c.b16 %v773_v47, %v773_v47  ;;  %1567 = vmatpush.bf16.msra.mxu2 %v2098_v56  ;;  %v2386_v36 = vor.u32 %v2643_v24, %v2383_v25  ;;  %v2295_v46 = vld [vmem:[#allocation9 + $0x298] sm:$0xf0]  ;;  %v2639_v47 = vld [vmem:[#allocation9 + $0x324] sm:$0xf]  ;;  %v2367_v48 = vld [vmem:[#allocation9 + $0x328] sm:$0xf0] }
  0xe9   :  { %1587 = vmatpush.bf16.msrb.mxu0 %v2274_v41  ;;  %1580 = vmatpush.bf16.msra.mxu3 %v2162_v57  ;;  %v2657_v41 = vld [vmem:[#allocation9 + $0x3b4] sm:$0xf]  ;;  %v2298_v53 = vor.u32 %v2621_v45, %v2295_v46  ;;  %v2431_v55 = vld [vmem:[#allocation9 + $0x3a8] sm:$0xf0]  ;;  %v2603_v56 = vld [vmem:[#allocation9 + $0x204] sm:$0xf]  ;;  %v2370_v62 = vor.u32 %v2639_v47, %v2367_v48 }
  0xea   :  { %1516 = vmatmul.bf16.vlgmr.msrb.gmra.mxu2 %v2934_v58  ;;  %1529 = vmatmul.bf16.vlgmr.msrb.gmra.mxu3 %v2936_v59  ;;  %v2223_v57 = vld [vmem:[#allocation9 + $0x208] sm:$0xf0]  ;;  %v2434_v63 = vor.u32 %v2655_v54, %v2431_v55 }
  0xeb   :  { %1600 = vmatpush.bf16.msrb.mxu1 %v2338_v42  ;;  %v2439_v42 = vld [vmem:[#allocation9 + $0x3b8] sm:$0xf0] }
  0xec   :  { %1612 = vmatpush.bf16.msrb.mxu2 %v2410_v60  ;;  %v2619_v60 = vld [vmem:[#allocation9 + $0x284] sm:$0xf] }
  0xed   :  { %1625 = vmatpush.bf16.msrb.mxu3 %v2474_v61  ;;  %1588 = vmatpush.bf16.msrb.mxu0 %v2266_v0  ;;  %v2287_v61 = vld [vmem:[#allocation9 + $0x288] sm:$0xf0]  ;;  %v2637_v0 = vld [vmem:[#allocation9 + $0x314] sm:$0xf] }
  0xee   :  { %v2290_v2 = vor.u32 %v2619_v60, %v2287_v61 }
  0xef   :  { %1601 = vmatpush.bf16.msrb.mxu1 %v2330_v1  ;;  %v2226_v1 = vor.u32 %v2603_v56, %v2223_v57 }
  0xf0   :  { %1613 = vmatpush.bf16.msrb.mxu2 %v2402_v8  ;;  %v2651_v8 = vld [vmem:[#allocation9 + $0x384] sm:$0xf] }
  0xf1   :  { %1626 = vmatpush.bf16.msrb.mxu3 %v2466_v9  ;;  %1589 = vmatpush.bf16.msrb.mxu0 %v2258_v12  ;;  %v2415_v9 = vld [vmem:[#allocation9 + $0x388] sm:$0xf0] }
  0xf2   :  { %1542 = vmatmul.bf16.vlgmr.msra.gmra.mxu0 %v2910_v31  ;;  %1555 = vmatmul.bf16.vlgmr.msra.gmra.mxu1 %v2912_v32  ;;  %v2378_v31 = vor.u32 %v2641_v38, %v2375_v39  ;;  %v2442_v32 = vor.u32 %v2657_v41, %v2439_v42  ;;  %v2418_v11 = vor.u32 %v2651_v8, %v2415_v9 }
  0xf3   :  { %1602 = vmatpush.bf16.msrb.mxu1 %v2322_v13 }
  0xf4   :  { %1614 = vmatpush.bf16.msrb.mxu2 %v2394_v20 }
  0xf5   :  { %1627 = vmatpush.bf16.msrb.mxu3 %v2458_v21  ;;  %1590 = vmatpush.bf16.msrb.mxu0 %v2250_v26 }
  0xf7   :  { %1603 = vmatpush.bf16.msrb.mxu1 %v2314_v27 }
  0xf8   :  { %1615 = vmatpush.bf16.msrb.mxu2 %v2386_v36 }
  0xf9   :  { %1628 = vmatpush.bf16.msrb.mxu3 %v2450_v37  ;;  %1591 = vmatpush.bf16.msrb.mxu0 %v2242_v40 }
  0xfa   :  { %1568 = vmatmul.bf16.vlgmr.msra.gmra.mxu2 %v2916_v51  ;;  %1581 = vmatmul.bf16.vlgmr.msra.gmra.mxu3 %v2918_v52  ;;  %v2362_v51 = vor.u32 %v2637_v0, %v2359_v3  ;;  %v2635_v52 = vld [vmem:[#allocation9 + $0x304] sm:$0xf] }
  0xfb   :  { %1604 = vmatpush.bf16.msrb.mxu1 %v2306_v50  ;;  %v2354_v10 = vor.u32 %v2635_v52, %v2351_v7 }
  0xfc   :  { %1616 = vmatpush.bf16.msrb.mxu2 %v2378_v31 }
  0xfd   :  { %1629 = vmatpush.bf16.msrb.mxu3 %v2442_v32  ;;  %1592 = vmatpush.bf16.msrb.mxu0 %v2234_v49 }
  0xff   :  { %1605 = vmatpush.bf16.msrb.mxu1 %v2298_v53 }
 0x100   :  { %1617 = vmatpush.bf16.msrb.mxu2 %v2370_v62 }
 0x101   :  { %1630 = vmatpush.bf16.msrb.mxu3 %v2434_v63  ;;  %1593 = vmatpush.bf16.msrb.mxu0 %v2226_v1 }
 0x103   :  { %1606 = vmatpush.bf16.msrb.mxu1 %v2290_v2  ;;  %v2843_v2 = vmov 256.0  }
 0x104   :  { %1618 = vmatpush.bf16.msrb.mxu2 %v2362_v51  ;;  %1594 = vmatmul.bf16.vlgmr.msrb.gmra.mxu0 %v2928_v22  ;;  %2678 = vrcp.f32 %v2843_v2 }
 0x105   :  { %1631 = vmatpush.bf16.msrb.mxu3 %v2426_v6 }
 0x106   :  { %1607 = vmatmul.bf16.vlgmr.msrb.gmra.mxu1 %v2930_v23 }
 0x108   :  { %1619 = vmatpush.bf16.msrb.mxu2 %v2354_v10 }
 0x109   :  { %1632 = vmatpush.bf16.msrb.mxu3 %v2418_v11 }
 0x10a   :  { %v2679_v3 = vpop.eup %2678 }
 0x10b   :  { %1620 = vmatmul.bf16.vlgmr.msrb.gmra.mxu2 %v2934_v58  ;;  %v756_v58 = vld [vmem:[%s2961_s4] sm:$0x3]  ;;  %v1642_v4 = vmul.f32 256.0, %v2679_v3  ;;  %vm1646_vm0 = vweird.f32 %v2679_v3 }
 0x10c   :  { %1633 = vmatmul.bf16.vlgmr.msrb.gmra.mxu3 %v2936_v59  ;;  %v758_v59 = vperm.slane %v756_v58, 0  ;;  %v759_v30 = vperm.slane %v756_v58, 1 }
 0x10d   :  { %v1643_v5 = vsub.f32 1.0, %v1642_v4 }
 0x10f   :  { %v1644_v51 = vmul.f32 %v2679_v3, %v1643_v5 }
 0x111   :  { %v1645_v6 = vadd.f32 %v2679_v3, %v1644_v51 }
 0x113   :  { %v1647_v52 = vsel %vm1646_vm0, %v2679_v3, %v1645_v6 }
 0x13f   :  { %v1439_v12 = vpop.f32.mrf.mxu0  ;;  %v1452_v13 = vpop.f32.mrf.mxu1 }
 0x140   :  { %v1440_v35 = vadd.f32 %v1439_v12, %v758_v59 }
 0x142   :  { %v1453_v37 = vadd.f32 %v1452_v13, %v1440_v35 }
 0x147   :  { %v1441_v14 = vpop.f32.mrf.mxu0  ;;  %v1454_v15 = vpop.f32.mrf.mxu1 }
 0x14e   :  { %v1465_v16 = vpop.f32.mrf.mxu2  ;;  %v1478_v17 = vpop.f32.mrf.mxu3 }
 0x14f   :  { %v1466_v50 = vadd.f32 %v1465_v16, %v1453_v37 }
 0x151   :  { %v1479_v44 = vadd.f32 %v1478_v17, %v1466_v50 }
 0x156   :  { %v1467_v18 = vpop.f32.mrf.mxu2  ;;  %v1480_v19 = vpop.f32.mrf.mxu3 }
 0x15f   :  { %v1491_v20 = vpop.f32.mrf.mxu0  ;;  %v1504_v21 = vpop.f32.mrf.mxu1 }
 0x160   :  { %v1492_v32 = vadd.f32 %v1491_v20, %v1479_v44 }
 0x162   :  { %v1505_v53 = vadd.f32 %v1504_v21, %v1492_v32 }
 0x167   :  { %v1493_v24 = vpop.f32.mrf.mxu0  ;;  %v1506_v22 = vpop.f32.mrf.mxu1 }
 0x168   :  { %v1670_v24 = vld [vmem:[%s2962_s5] sm:$0x3] }
 0x16d   :  { %v1517_v25 = vpop.f32.mrf.mxu2  ;;  %v1530_v23 = vpop.f32.mrf.mxu3 }
 0x16e   :  { %v1518_v54 = vadd.f32 %v1517_v25, %v1505_v53  ;;  %v1678_v25 = vld [vmem:[#allocation11] sm:$0x3] }
 0x16f   :  { %v1543_v26 = vpop.f32.mrf.mxu0  ;;  %v1556_v27 = vpop.f32.mrf.mxu1 }
 0x170   :  { %v1544_v36 = vadd.f32 %v1543_v26, %v759_v30  ;;  %v1531_v61 = vadd.f32 %v1530_v23, %v1518_v54  ;;  %v1672_v23 = vperm.slane %v1670_v24, 0  ;;  %v1673_v26 = vperm.slane %v1670_v24, 1 }
 0x172   :  { %v1557_v40 = vadd.f32 %v1556_v27, %v1544_v36 }
 0x175   :  { %v1519_v28 = vpop.f32.mrf.mxu2  ;;  %v1532_v29 = vpop.f32.mrf.mxu3 }
 0x176   :  { %v1680_v28 = vperm.slane %v1678_v25, 0  ;;  %v1681_v29 = vperm.slane %v1678_v25, 1 }
 0x177   :  { %v1545_v33 = vpop.f32.mrf.mxu0  ;;  %v1558_v34 = vpop.f32.mrf.mxu1 }
 0x17d   :  { %v1569_v38 = vpop.f32.mrf.mxu2  ;;  %v1582_v39 = vpop.f32.mrf.mxu3 }
 0x17e   :  { %v1570_v41 = vadd.f32 %v1569_v38, %v1557_v40 }
 0x180   :  { %v1583_v45 = vadd.f32 %v1582_v39, %v1570_v41 }
 0x181   :  { %v1595_v42 = vpop.f32.mrf.mxu0 }
 0x182   :  { %v1596_v47 = vadd.f32 %v1595_v42, %v1583_v45 }
 0x183   :  { %v1608_v43 = vpop.f32.mrf.mxu1 }
 0x184   :  { %v1609_v55 = vadd.f32 %v1608_v43, %v1596_v47 }
 0x185   :  { %v1571_v46 = vpop.f32.mrf.mxu2  ;;  %v1584_v31 = vpop.f32.mrf.mxu3 }
 0x189   :  { %v1597_v48 = vpop.f32.mrf.mxu0 }
 0x18b   :  { %v1610_v49 = vpop.f32.mrf.mxu1 }
 0x18e   :  { %v1621_v56 = vpop.f32.mrf.mxu2 }
 0x18f   :  { %v1634_v57 = vpop.f32.mrf.mxu3  ;;  %v1622_v60 = vadd.f32 %v1621_v56, %v1609_v55 }
 0x191   :  { %v1635_v62 = vadd.f32 %v1634_v57, %v1622_v60 }
 0x193   :  { %v1638_v63 = vadd.f32 %v1635_v62, %v1531_v61 }
 0x195   :  { %1639 = vadd.xlane.f32.xlu0 %v1638_v63 }
 0x196   :  { %v1623_v0 = vpop.f32.mrf.mxu2 }
 0x197   :  { %v1636_v1 = vpop.f32.mrf.mxu3 }
 0x208   :  { %v1640_v7 = vpop.xlane.xlu0 %1639 }
 0x209   :  { %v1648_v8 = vmul.f32 %v1647_v52, %v1640_v7 }
 0x20b   :  { %v1649_v9 = vsub.f32 %v1531_v61, %v1648_v8  ;;  %v1650_v10 = vsub.f32 %v1635_v62, %v1648_v8 }
 0x20d   :  { %v1651_v11 = vmul.f32 %v1649_v9, %v1649_v9  ;;  %v1652_v12 = vmul.f32 %v1650_v10, %v1650_v10 }
 0x20f   :  { %v1653_v13 = vadd.f32 %v1652_v12, %v1651_v11 }
 0x211   :  { %1654 = vadd.xlane.f32.xlu0 %v1653_v13 }
 0x284   :  { %v1655_v14 = vpop.xlane.xlu0 %1654 }
 0x285   :  { %v1656_v15 = vmul.f32 %v1655_v14, %v1647_v52 }
 0x287   :  { %v1657_v16 = vadd.f32 1e-05, %v1656_v15 }
 0x289   :  { %2680 = vrsqrt.f32 %v1657_v16  ;;  %vm1664_vm2 = vweird.f32 %v1657_v16 }
 0x28f   :  { %v2681_v17 = vpop.eup %2680 }
 0x290   :  { %v1659_v18 = vmul.f32 %v2681_v17, %v1657_v16  ;;  %vm1665_vm1 = vweird.f32 %v2681_v17 }
 0x291   :  { %vm1666_vm3 = vmor %vm1664_vm2, %vm1665_vm1 }
 0x292   :  { %v1660_v19 = vmul.f32 %v2681_v17, %v1659_v18 }
 0x294   :  { %v1661_v20 = vmul.f32 0.5, %v1660_v19 }
 0x296   :  { %v1662_v21 = vsub.f32 1.5, %v1661_v20 }
 0x298   :  { %v1663_v22 = vmul.f32 %v2681_v17, %v1662_v21 }
 0x29a   :  { %v1667_v27 = vsel %vm1666_vm3, %v2681_v17, %v1663_v22 }
 0x29b   :  { %v1668_v58 = vmul.f32 %v1667_v27, %v1649_v9  ;;  %v1669_v59 = vmul.f32 %v1667_v27, %v1650_v10 }
 0x29d   :  { %v1676_v30 = vmul.f32 %v1672_v23, %v1668_v58  ;;  %v1677_v33 = vmul.f32 %v1673_v26, %v1669_v59 }
 0x29f   :  { %v1684_v34 = vadd.f32 %v1680_v28, %v1676_v30  ;;  %v1685_v35 = vadd.f32 %v1681_v29, %v1677_v33 }
 0x2a1   :  { %1686 = vst [vmem:[#allocation12] sm:$0xff] %v1684_v34 }
 0x2a2   :  { %1687 = vst [vmem:[#allocation12 + $0x8] sm:$0xff] %v1685_v35 }
 0x2a3   :  { %1698 = dma.vmem_to_hbm [thread:$0]  %s1694_s29, 256, %s1696_s9, [#allocation5]  }
 0x2a4   :  { %2832 = dma.done.wait [#allocation5], 256  }
 0x2a5   :  { %2833 = vsyncadd [#allocation5], 4294967040 }
 0x2a6   :  { %1703 = vsyncpa [#allocation4], 1 }
 0x2a7   :  { %1704 = vsyncpa [#allocation7], 1 }
 0x2a8   :  { %1705 = vsyncpa [#allocation10], 1 }
 0x2a9   :  { %1706 = vsyncpa [#allocation5], 1 }

</bundles_post_ra>
